<compile_context>
chip_gen: v7x
topology: tpu7x:2x2x1
jax: 0.10.0
libtpu: 0.0.40
codegen_flags: <defaults>
</compile_context>

<pallas_src>
import jax
import jax.numpy as jnp
from jax import lax
from jax.experimental import pallas as pl
from jax.experimental.pallas import tpu as pltpu


def _round_up(x, m):
    return ((x + m - 1) // m) * m


def _tpu_budgets():
    """(agg_tile_byte_cap, vmem_limit_bytes) — larger on 128-MiB-VMEM parts."""
    cap = None
    try:
        cap = getattr(pltpu.get_tpu_info(), "vmem_capacity_bytes", None)
    except Exception:
        cap = None
    if cap is not None and cap >= 100 * 1024 * 1024:      # v5e / v6e (128 MiB)
        return 24 * 1024 * 1024, 64 * 1024 * 1024
    return 12 * 1024 * 1024, 32 * 1024 * 1024             # v7x / unknown


_AGG_TILE_CAP, _VMEM_LIMIT = _tpu_budgets()


# ----------------------------------------------------------------------------
# Kernel 1a: FUSED neighborhood aggregation (in-kernel gather).
#   node[n] = (sum_k tab_a[idx_a[n,k]] + tab_b[idx_b[n,k]]) * inv_k(n) + self[n]
# Index arrays live in SMEM (scalar prefetch); tables are resident in VMEM.
# ----------------------------------------------------------------------------
def _make_fused_agg_kernel(tn, d_pad, k_max, nn_rows, n_total,
                           inv_kn, inv_ke, emit_bf16):
    def kernel(idx_a_ref, idx_b_ref, tab_a_ref, tab_b_ref, self_ref, *out_refs):
        out_ref = out_refs[0]
        row0 = pl.program_id(0) * tn
        # Zero-init the tile so padded rows (>= n_total) stay finite/zero:
        # downstream they only meet zero-padded interact_mat columns.
        out_ref[...] = jnp.zeros_like(out_ref)
        n_valid = jnp.clip(n_total - row0, 0, tn)

        def row_body(r, carry):
            g = row0 + r                       # global node row (< n_total)
            base = g * k_max
            acc = jnp.zeros((1, d_pad), jnp.float32)
            # K_max is a small static constant: static unroll -> K VPU adds;
            # the live accumulator is a single (1, d_pad) f32 row (no spills).
            for k in range(k_max):
                ia = idx_a_ref[base + k]
                ib = idx_b_ref[base + k]
                acc = (acc
                       + tab_a_ref[pl.ds(ia, 1), :]
                       + tab_b_ref[pl.ds(ib, 1), :])
            inv_k = jnp.where(g < nn_rows, inv_kn, inv_ke)
            out_ref[pl.ds(r, 1), :] = acc * inv_k
            return carry

        lax.fori_loop(0, n_valid, row_body, 0)
        # self-embedding add and optional bf16 emission are full-tile vector ops.
        out_ref[...] = out_ref[...] + self_ref[...]
        if emit_bf16:
            out_refs[1][...] = out_ref[...].astype(jnp.bfloat16)

    return kernel


def _aggregate_fused(idx_a_flat, idx_b_flat, tab_a, tab_b, self_emb,
                     nn_rows, k_n, k_e, n_total, emit_bf16):
    n_pad, d_pad = self_emb.shape
    k_max = max(k_n, k_e)
    # >=2 row tiles whenever possible (keeps both v7x TensorCores busy).
    tn = 512 if n_pad >= 1024 else 256
    grid = (n_pad // tn,)

    out_shapes = [jax.ShapeDtypeStruct((n_pad, d_pad), jnp.float32)]
    out_specs = [pl.BlockSpec((tn, d_pad), lambda i, *_: (i, 0))]
    if emit_bf16:
        out_shapes.append(jax.ShapeDtypeStruct((n_pad, d_pad), jnp.bfloat16))
        out_specs.append(pl.BlockSpec((tn, d_pad), lambda i, *_: (i, 0)))

    kernel = _make_fused_agg_kernel(tn, d_pad, k_max, nn_rows, n_total,
                                    1.0 / k_n, 1.0 / k_e, emit_bf16)
    out = pl.pallas_call(
        kernel,
        out_shape=out_shapes,
        grid_spec=pltpu.PrefetchScalarGridSpec(
            num_scalar_prefetch=2,
            grid=grid,
            in_specs=[
                pl.BlockSpec(tab_a.shape, lambda i, *_: (0, 0)),   # resident table
                pl.BlockSpec(tab_b.shape, lambda i, *_: (0, 0)),   # resident table
                pl.BlockSpec((tn, d_pad), lambda i, *_: (i, 0)),   # self rows
            ],
            out_specs=out_specs),
        compiler_params=pltpu.CompilerParams(
            dimension_semantics=("parallel",),
            vmem_limit_bytes=_VMEM_LIMIT),
    )(idx_a_flat, idx_b_flat, tab_a, tab_b, self_emb)
    return out[0], (out[1] if emit_bf16 else None)


# ----------------------------------------------------------------------------
# Kernel 1b: fallback aggregation over XLA-gathered (K, N, D) neighbor tensors
# (used only when the tables do not fit VMEM / indices exceed SMEM budget).
# Neighbor tensors may be bf16 (reduced-precision opt-in); accumulate in f32.
# ----------------------------------------------------------------------------
def _agg_gathered_kernel(na_ref, nb_ref, self_ref, invk_ref, out_ref):
    k_max = na_ref.shape[0]
    acc = na_ref[0].astype(jnp.float32) + nb_ref[0].astype(jnp.float32)
    for k in range(1, k_max):
        acc = acc + na_ref[k].astype(jnp.float32) + nb_ref[k].astype(jnp.float32)
    out_ref[...] = acc * invk_ref[...] + self_ref[...]


def _aggregate_gathered(neigh_a, neigh_b, self_emb, inv_k, tile_cap):
    k_max, n_pad, d_pad = neigh_a.shape
    nbytes = neigh_a.dtype.itemsize
    # double-buffered per-row footprint: 2 neighbor streams + self + out (f32).
    bytes_per_row = (2 * 2 * k_max * nbytes + 2 * 2 * 4) * d_pad
    tn = 16                                    # minimum legal (bf16 sublane tile)
    for cand in (512, 256, 128, 64, 32, 16):
        if n_pad % cand == 0 and cand * bytes_per_row <= tile_cap:
            tn = cand
            break
    grid = (n_pad // tn,)
    return pl.pallas_call(
        _agg_gathered_kernel,
        out_shape=jax.ShapeDtypeStruct((n_pad, d_pad), jnp.float32),
        grid=grid,
        in_specs=[
            pl.BlockSpec((k_max, tn, d_pad), lambda i: (0, i, 0)),
            pl.BlockSpec((k_max, tn, d_pad), lambda i: (0, i, 0)),
            pl.BlockSpec((tn, d_pad), lambda i: (i, 0)),
            pl.BlockSpec((tn, 1), lambda i: (i, 0)),
        ],
        out_specs=pl.BlockSpec((tn, d_pad), lambda i: (i, 0)),
        compiler_params=pltpu.CompilerParams(
            dimension_semantics=("parallel",),
            vmem_limit_bytes=_VMEM_LIMIT),
    )(neigh_a, neigh_b, self_emb, inv_k)


# ----------------------------------------------------------------------------
# Kernel 2: tiled user aggregation
#   user_agg = interact_mat @ node_emb   (K-tiled, f32 VMEM accumulator)
#   out      = user_agg * (mix + 1)      (mix = score @ disen, hoisted)
# ----------------------------------------------------------------------------
def _user_matmul_kernel(inter_ref, node_ref, mix_ref, out_ref, acc_ref):
    k = pl.program_id(1)

    @pl.when(k == 0)
    def _():
        acc_ref[...] = jnp.zeros_like(acc_ref)

    acc_ref[...] += jnp.dot(inter_ref[...], node_ref[...],
                            preferred_element_type=jnp.float32)

    @pl.when(k == pl.num_programs(1) - 1)
    def _():
        out_ref[...] = acc_ref[...] * (mix_ref[...] + 1.0)


def _user_aggregate(inter, node_emb, mix):
    # TODO(synk): interact_mat consumed dense; CSR block-skipping path needs
    # sparse inputs the module does not expose.
    u_pad, n_pad = inter.shape
    d_pad = node_emb.shape[1]
    tk = 512 if n_pad % 512 == 0 else (256 if n_pad % 256 == 0 else 128)
    tm = 512 if (u_pad % 512 == 0 and u_pad >= 1024) else 256
    grid = (u_pad // tm, n_pad // tk)
    return pl.pallas_call(
        _user_matmul_kernel,
        out_shape=jax.ShapeDtypeStruct((u_pad, d_pad), jnp.float32),
        grid=grid,
        in_specs=[
            pl.BlockSpec((tm, tk), lambda i, k: (i, k)),
            pl.BlockSpec((tk, d_pad), lambda i, k: (k, 0)),
            pl.BlockSpec((tm, d_pad), lambda i, k: (i, 0)),
        ],
        out_specs=pl.BlockSpec((tm, d_pad), lambda i, k: (i, 0)),
        scratch_shapes=[pltpu.VMEM((tm, d_pad), jnp.float32)],
        compiler_params=pltpu.CompilerParams(
            dimension_semantics=("parallel", "arbitrary"),
            vmem_limit_bytes=_VMEM_LIMIT),
    )(inter, node_emb, mix)


# ----------------------------------------------------------------------------
# Forward wrapper (index construction / padding is plain-JAX glue)
# ----------------------------------------------------------------------------
def aggregator_forward(user_emb, all_embedding, entity_emb, relation_emb,
                       latent_emb, interact_mat, weight, disen_weight_att,
                       newsid, news_entities, news_relations,
                       entities, neigh_entities, neigh_relations,
                       use_bf16_matmul=True, force_gather_fallback=False):
    f32 = jnp.float32
    D = all_embedding.shape[1]
    D_pad = _round_up(D, 128)
    Nn, Kn = news_entities.shape
    Ne, Ke = neigh_entities.shape
    N_total = Nn + Ne
    K_max = max(Kn, Ke)
    n_entity = entity_emb.shape[0]

    def pad_d(t):
        return jnp.pad(t.astype(f32), ((0, 0), (0, D_pad - t.shape[1])))

    all_emb_p = pad_d(all_embedding)
    ent_emb_p = pad_d(entity_emb)
    rel_emb_p = pad_d(relation_emb)
    weight_p = pad_d(weight)

    ent_self = all_emb_p[entities]                                # (Ne, D_pad)

    # combined gather tables with a trailing zero row so rows whose K < K_max
    # can pad their neighbor list without changing the sum.
    tab_a = jnp.concatenate([ent_emb_p, ent_self,
                             jnp.zeros((1, D_pad), f32)], axis=0)
    zero_a = tab_a.shape[0] - 1
    tab_b = jnp.concatenate([rel_emb_p, jnp.zeros((1, D_pad), f32)], axis=0)
    zero_b = tab_b.shape[0] - 1

    idx_a = jnp.concatenate([
        jnp.pad(news_entities.astype(jnp.int32), ((0, 0), (0, K_max - Kn)),
                constant_values=zero_a),
        jnp.pad(neigh_entities.astype(jnp.int32) + n_entity,
                ((0, 0), (0, K_max - Ke)), constant_values=zero_a)], axis=0)
    idx_b = jnp.concatenate([
        jnp.pad(news_relations.astype(jnp.int32), ((0, 0), (0, K_max - Kn)),
                constant_values=zero_b),
        jnp.pad(neigh_relations.astype(jnp.int32), ((0, 0), (0, K_max - Ke)),
                constant_values=zero_b)], axis=0)                 # (N_total, K_max)

    self_idx = jnp.concatenate([newsid.astype(jnp.int32),
                                entities.astype(jnp.int32)], axis=0)

    # one shared row padding for node_emb AND the matmul reduction axis;
    # multiple of 512 so the user matmul always gets tk=512.
    N_pad = _round_up(N_total, 512)
    self_emb = jnp.pad(all_emb_p[self_idx], ((0, N_pad - N_total), (0, 0)))

    # ---- kernel 1: neighborhood aggregation ----
    table_bytes = (tab_a.shape[0] + tab_b.shape[0]) * D_pad * 4
    idx_bytes = N_total * K_max * 4
    fused_ok = (not force_gather_fallback
                and 2 * table_bytes <= _VMEM_LIMIT // 2          # dbl-buffered tables
                and idx_bytes <= 128 * 1024)                      # SMEM headroom
    if fused_ok:
        node_f32, node_bf16 = _aggregate_fused(
            idx_a.reshape(-1), idx_b.reshape(-1), tab_a, tab_b, self_emb,
            Nn, Kn, Ke, N_total, emit_bf16=use_bf16_matmul)
    else:
        # TODO(synk): a manual-DMA gather path (tables staying in HBM, per-row
        # double-buffered make_async_copy) would avoid this HBM materialization
        # when the tables are too big for VMEM / indices too big for SMEM.
        gdt = jnp.bfloat16 if use_bf16_matmul else f32           # bf16 = opt-in
        idx_a_p = jnp.pad(idx_a, ((0, N_pad - N_total), (0, 0)),
                          constant_values=zero_a)
        idx_b_p = jnp.pad(idx_b, ((0, N_pad - N_total), (0, 0)),
                          constant_values=zero_b)
        neigh_a = tab_a.astype(gdt)[idx_a_p.T]                   # (K_max, N_pad, D_pad)
        neigh_b = tab_b.astype(gdt)[idx_b_p.T]
        inv_k = jnp.concatenate([jnp.full((Nn,), 1.0 / Kn, f32),
                                 jnp.full((Ne,), 1.0 / Ke, f32)])
        inv_k = jnp.pad(inv_k, (0, N_pad - N_total), constant_values=1.0)[:, None]
        node_f32 = _aggregate_gathered(neigh_a, neigh_b, self_emb, inv_k,
                                       _AGG_TILE_CAP)
        node_bf16 = node_f32.astype(jnp.bfloat16) if use_bf16_matmul else None

    # ---- kernel 2: user aggregation ----
    U = user_emb.shape[0]
    U_pad = _round_up(U, 256)        # avoids the tm=8 cliff for arbitrary U

    # tiny, K-independent factor-mixing work hoisted out of the matmul loop;
    # softmaxes run on UN-padded logical extents (no padded-lane leakage).
    score = jax.nn.softmax(user_emb.astype(f32) @ latent_emb.astype(f32).T, axis=1)
    disen = jax.nn.softmax(disen_weight_att.astype(f32), axis=-1) @ weight_p
    mix = score @ disen                                          # (U, D_pad)
    mix_p = jnp.pad(mix, ((0, U_pad - U), (0, 0)))

    inter_p = jnp.pad(interact_mat.astype(f32),
                      ((0, U_pad - U), (0, N_pad - N_total)))
    if use_bf16_matmul:
        # TODO(synk): accept interact_mat already in bf16 to drop this cast pass.
        inter_p = inter_p.astype(jnp.bfloat16)
        node_mm = node_bf16
    else:
        node_mm = node_f32

    user_agg_p = _user_aggregate(inter_p, node_mm, mix_p)        # (U_pad, D_pad)

    return node_f32[:N_total, :D], user_agg_p[:U, :D]


# ----------------------------------------------------------------------------
# Pure-JAX reference (mirrors the PyTorch forward exactly)
# ----------------------------------------------------------------------------
def reference_forward(user_emb, all_embedding, entity_emb, relation_emb,
                      latent_emb, interact_mat, weight, disen_weight_att,
                      newsid, news_entities, news_relations,
                      entities, neigh_entities, neigh_relations,
                      n_users, n_factors):
    news_emb = all_embedding[newsid]
    news_agg = jnp.mean(entity_emb[news_entities] + relation_emb[news_relations],
                        axis=1)
    ent_self = all_embedding[entities]
    entity_agg = jnp.mean(relation_emb[neigh_relations] + ent_self[neigh_entities],
                          axis=1)
    node_emb = jnp.concatenate([news_agg + news_emb, entity_agg + ent_self],
                               axis=0)
    score = jax.nn.softmax(user_emb @ latent_emb.T, axis=1)[:, :, None]
    user_agg = interact_mat @ node_emb
    disen = jax.nn.softmax(disen_weight_att, axis=-1) @ weight
    disen_exp = jnp.broadcast_to(disen[None], (n_users, n_factors, disen.shape[-1]))
    user_agg = user_agg * (disen_exp * score).sum(axis=1) + user_agg
    return node_emb, user_agg


if __name__ == "__main__":
    key = jax.random.PRNGKey(0)

    n_users, n_factors = 8, 4
    n_news, n_entity = 6, 16
    k_news, k_ent = 5, 20          # neighbors per news / per entity (module uses 20)
    n_relations = 3
    d_emb = 100                    # fixed by the module's `.expand(..., 100)`
    d_latent = 32
    n_all = n_news + n_entity
    n_nodes = n_news + n_entity

    ks = jax.random.split(key, 12)
    user_emb = jax.random.normal(ks[0], (n_users, d_latent), jnp.float32)
    all_embedding = jax.random.normal(ks[1], (n_all, d_emb), jnp.float32)
    entity_emb = jax.random.normal(ks[2], (n_entity, d_emb), jnp.float32)
    relation_emb = jax.random.normal(ks[3], (n_relations, d_emb), jnp.float32)
    latent_emb = jax.random.normal(ks[4], (n_factors, d_latent), jnp.float32)
    interact_mat = ((jax.random.uniform(ks[5], (n_users, n_nodes)) < 0.3)
                    .astype(jnp.float32)
                    * jax.random.normal(ks[6], (n_users, n_nodes), jnp.float32))
    weight = jax.random.normal(ks[7], (n_relations, d_emb), jnp.float32)
    disen_weight_att = jax.random.normal(ks[8], (n_factors, n_relations),
                                         jnp.float32)

    newsid = jnp.arange(n_news, dtype=jnp.int32)
    news_entities = jax.random.randint(ks[9], (n_news, k_news), 0, n_entity,
                                       dtype=jnp.int32)
    news_relations = jnp.zeros((n_news, k_news), jnp.int32)
    entities = jnp.arange(n_entity, dtype=jnp.int32)
    neigh_entities = jax.random.randint(ks[10], (n_entity, k_ent), 0, n_entity,
                                        dtype=jnp.int32)
    neigh_relations = jax.random.randint(ks[11], (n_entity, k_ent), 0,
                                         n_relations, dtype=jnp.int32)

    args = (user_emb, all_embedding, entity_emb, relation_emb,
            latent_emb, interact_mat, weight, disen_weight_att,
            newsid, news_entities, news_relations,
            entities, neigh_entities, neigh_relations)

    fwd = jax.jit(aggregator_forward,
                  static_argnames=("use_bf16_matmul", "force_gather_fallback"))

    node_ref, user_ref = reference_forward(
        *args, n_users=n_users, n_factors=n_factors)

    # 1) fused in-kernel gather, exact f32 path
    node_emb, user_agg = jax.block_until_ready(
        fwd(*args, use_bf16_matmul=False, force_gather_fallback=False))
    assert node_emb.shape == (n_nodes, d_emb)
    assert user_agg.shape == (n_users, d_emb)
    assert jnp.allclose(node_emb, node_ref, rtol=1e-4, atol=1e-4)
    assert jnp.allclose(user_agg, user_ref, rtol=1e-4, atol=1e-4)

    # 2) fused gather + bf16 MXU operands (node_emb stays exact f32)
    node_bf, user_bf = jax.block_until_ready(
        fwd(*args, use_bf16_matmul=True, force_gather_fallback=False))
    assert jnp.allclose(node_bf, node_ref, rtol=1e-4, atol=1e-4)
    assert jnp.allclose(user_bf, user_ref, rtol=1e-1, atol=1e-1)

    # 3) fallback (HBM-gathered neighbors), exact f32 path
    node_fb, user_fb = jax.block_until_ready(
        fwd(*args, use_bf16_matmul=False, force_gather_fallback=True))
    assert jnp.allclose(node_fb, node_ref, rtol=1e-4, atol=1e-4)
    assert jnp.allclose(user_fb, user_ref, rtol=1e-4, atol=1e-4)

    # 4) fallback with bf16 neighbor stream + bf16 MXU operands
    node_fb16, user_fb16 = jax.block_until_ready(
        fwd(*args, use_bf16_matmul=True, force_gather_fallback=True))
    assert jnp.allclose(node_fb16, node_ref, rtol=3e-2, atol=3e-2)
    assert jnp.allclose(user_fb16, user_ref, rtol=1e-1, atol=1e-1)

    print("KERNEL_OK")
</pallas_src>

<mosaic_0001>
module attributes {stable_mosaic.version = 11 : i64} {
  func.func @_user_matmul_kernel(%arg0: i32, %arg1: i32, %arg2: memref<256x512xf32, #tpu.memory_space<vmem>>, %arg3: memref<512x128xf32, #tpu.memory_space<vmem>>, %arg4: memref<256x128xf32, #tpu.memory_space<vmem>>, %arg5: memref<256x128xf32, #tpu.memory_space<vmem>>, %arg6: memref<256x128xf32, #tpu.memory_space<vmem>>) attributes {dimension_semantics = [#tpu.dimension_semantics<parallel>, #tpu.dimension_semantics<arbitrary>], iteration_bounds = array<i64: 1, 1>, scalar_prefetch = 0 : i64, scratch_operands = 1 : i64, tpu.core_type = #tpu.core_type<tc>, window_params = [{transform_indices = @transform_0, window_bounds = array<i64: 256, 512>}, {transform_indices = @transform_1, window_bounds = array<i64: 512, 128>}, {transform_indices = @transform_2, window_bounds = array<i64: 256, 128>}, {transform_indices = @transform_3, window_bounds = array<i64: 256, 128>}]} {
    %c0_i32 = arith.constant 0 : i32
    %0 = arith.cmpi eq, %arg1, %c0_i32 : i32
    %1 = arith.extui %0 : i1 to i32
    %c0_i32_0 = arith.constant 0 : i32
    %2 = arith.cmpi ne, %1, %c0_i32_0 : i32
    scf.if %2 {
      %cst_10 = arith.constant 0.000000e+00 : f32
      %12 = vector.broadcast %cst_10 : f32 to vector<256x128xf32>
      %c0_11 = arith.constant 0 : index
      %c0_12 = arith.constant 0 : index
      %13 = vector.load %arg6[%c0_11, %c0_12] : memref<256x128xf32, #tpu.memory_space<vmem>>, vector<256x128xf32>
      tpu.vector_store %arg6[%c0_11, %c0_12], %12 {strides = array<i32>} : memref<256x128xf32, #tpu.memory_space<vmem>>, vector<256x128xf32>,
    } else {
    }
    %c0 = arith.constant 0 : index
    %c0_1 = arith.constant 0 : index
    %3 = vector.load %arg6[%c0, %c0_1] : memref<256x128xf32, #tpu.memory_space<vmem>>, vector<256x128xf32>
    %c0_2 = arith.constant 0 : index
    %c0_3 = arith.constant 0 : index
    %4 = vector.load %arg2[%c0_2, %c0_3] : memref<256x512xf32, #tpu.memory_space<vmem>>, vector<256x512xf32>
    %c0_4 = arith.constant 0 : index
    %c0_5 = arith.constant 0 : index
    %5 = vector.load %arg3[%c0_4, %c0_5] : memref<512x128xf32, #tpu.memory_space<vmem>>, vector<512x128xf32>
    %cst = arith.constant dense<0.000000e+00> : vector<256x128xf32>
    %6 = tpu.matmul %4, %5, %cst {dimension_numbers = #tpu.dot_dimension_numbers<[1], [0], [0], [1], [0, 0, 1, 1], [], []>} : vector<256x512xf32>, vector<512x128xf32>, vector<256x128xf32> -> vector<256x128xf32>
    %7 = arith.addf %3, %6 : vector<256x128xf32>
    %c0_6 = arith.constant 0 : index
    %c0_7 = arith.constant 0 : index
    %8 = vector.load %arg6[%c0_6, %c0_7] : memref<256x128xf32, #tpu.memory_space<vmem>>, vector<256x128xf32>
    tpu.vector_store %arg6[%c0_6, %c0_7], %7 {strides = array<i32>} : memref<256x128xf32, #tpu.memory_space<vmem>>, vector<256x128xf32>,
    %c0_i32_8 = arith.constant 0 : i32
    %9 = arith.cmpi eq, %arg1, %c0_i32_8 : i32
    %10 = arith.extui %9 : i1 to i32
    %c0_i32_9 = arith.constant 0 : i32
    %11 = arith.cmpi ne, %10, %c0_i32_9 : i32
    scf.if %11 {
      %c0_10 = arith.constant 0 : index
      %c0_11 = arith.constant 0 : index
      %12 = vector.load %arg6[%c0_10, %c0_11] : memref<256x128xf32, #tpu.memory_space<vmem>>, vector<256x128xf32>
      %c0_12 = arith.constant 0 : index
      %c0_13 = arith.constant 0 : index
      %13 = vector.load %arg4[%c0_12, %c0_13] : memref<256x128xf32, #tpu.memory_space<vmem>>, vector<256x128xf32>
      %cst_14 = arith.constant 1.000000e+00 : f32
      %14 = vector.broadcast %cst_14 : f32 to vector<256x128xf32>
      %15 = arith.addf %13, %14 : vector<256x128xf32>
      %16 = arith.mulf %12, %15 : vector<256x128xf32>
      %c0_15 = arith.constant 0 : index
      %c0_16 = arith.constant 0 : index
      %17 = vector.load %arg5[%c0_15, %c0_16] : memref<256x128xf32, #tpu.memory_space<vmem>>, vector<256x128xf32>
      tpu.vector_store %arg5[%c0_15, %c0_16], %16 {strides = array<i32>} : memref<256x128xf32, #tpu.memory_space<vmem>>, vector<256x128xf32>,
    } else {
    }
    return
  }
  func.func @transform_0(%arg0: i32, %arg1: i32) -> (i32, i32) {
    %c0_i32 = arith.constant 0 : i32
    return %arg0, %arg1 : i32, i32
  }
  func.func @transform_1(%arg0: i32, %arg1: i32) -> (i32, i32) {
    %c0_i32 = arith.constant 0 : i32
    %c0_i32_0 = arith.constant 0 : i32
    return %arg1, %c0_i32 : i32, i32
  }
  func.func @transform_2(%arg0: i32, %arg1: i32) -> (i32, i32) {
    %c0_i32 = arith.constant 0 : i32
    %c0_i32_0 = arith.constant 0 : i32
    return %arg0, %c0_i32 : i32, i32
  }
  func.func @transform_3(%arg0: i32, %arg1: i32) -> (i32, i32) {
    %c0_i32 = arith.constant 0 : i32
    %c0_i32_0 = arith.constant 0 : i32
    return %arg0, %c0_i32 : i32, i32
  }
}

module attributes {stable_mosaic.version = 11 : i64} {
  func.func @kernel(%arg0: i32, %arg1: memref<440xi32, #tpu.memory_space<smem>>, %arg2: memref<440xi32, #tpu.memory_space<smem>>, %arg3: memref<33x128xf32, #tpu.memory_space<vmem>>, %arg4: memref<4x128xf32, #tpu.memory_space<vmem>>, %arg5: memref<256x128xf32, #tpu.memory_space<vmem>>, %arg6: memref<256x128xf32, #tpu.memory_space<vmem>>) attributes {dimension_semantics = [#tpu.dimension_semantics<parallel>], iteration_bounds = array<i64: 2>, scalar_prefetch = 2 : i64, scratch_operands = 0 : i64, tpu.core_type = #tpu.core_type<tc>, window_params = [{pipeline_mode = #tpu.pipeline_mode<synchronous>, transform_indices = @transform_0, window_bounds = array<i64: 33, 128>}, {pipeline_mode = #tpu.pipeline_mode<synchronous>, transform_indices = @transform_1, window_bounds = array<i64: 4, 128>}, {transform_indices = @transform_2, window_bounds = array<i64: 256, 128>}, {transform_indices = @transform_3, window_bounds = array<i64: 256, 128>}]} {
    %c256_i32 = arith.constant 256 : i32
    %0 = arith.muli %arg0, %c256_i32 : i32
    %cst = arith.constant 0.000000e+00 : f32
    %1 = vector.broadcast %cst : f32 to vector<256x128xf32>
    %c0 = arith.constant 0 : index
    %c0_0 = arith.constant 0 : index
    %2 = vector.load %arg6[%c0, %c0_0] : memref<256x128xf32, #tpu.memory_space<vmem>>, vector<256x128xf32>
    tpu.vector_store %arg6[%c0, %c0_0], %1 {strides = array<i32>} : memref<256x128xf32, #tpu.memory_space<vmem>>, vector<256x128xf32>,
    %c22_i32 = arith.constant 22 : i32
    %3 = arith.subi %c22_i32, %0 : i32
    %c0_i32 = arith.constant 0 : i32
    %c256_i32_1 = arith.constant 256 : i32
    %4 = arith.maxsi %c0_i32, %3 : i32
    %5 = arith.minsi %c256_i32_1, %4 : i32
    %c0_i32_2 = arith.constant 0 : i32
    %c0_i32_3 = arith.constant 0 : i32
    %6 = arith.subi %5, %c0_i32_3 : i32
    %7 = arith.addi %c0_i32_3, %6 : i32
    %c1_i32 = arith.constant 1 : i32
    scf.for %arg7 = %c0_i32_3 to %7 step %c1_i32  : i32 {
      %12 = arith.addi %0, %arg7 : i32
      %c20_i32 = arith.constant 20 : i32
      %13 = arith.muli %12, %c20_i32 : i32
      %cst_10 = arith.constant 0.000000e+00 : f32
      %14 = vector.broadcast %cst_10 : f32 to vector<1x128xf32>
      %c0_i32_11 = arith.constant 0 : i32
      %15 = arith.addi %13, %c0_i32_11 : i32
      %16 = arith.index_cast %15 : i32 to index
      %17 = memref.load %arg1[%16] : memref<440xi32, #tpu.memory_space<smem>>
      %c0_i32_12 = arith.constant 0 : i32
      %18 = arith.addi %13, %c0_i32_12 : i32
      %19 = arith.index_cast %18 : i32 to index
      %20 = memref.load %arg2[%19] : memref<440xi32, #tpu.memory_space<smem>>
      %21 = arith.index_cast %17 : i32 to index
      %c0_13 = arith.constant 0 : index
      %22 = vector.load %arg3[%21, %c0_13] : memref<33x128xf32, #tpu.memory_space<vmem>>, vector<1x128xf32>
      %23 = arith.addf %14, %22 : vector<1x128xf32>
      %24 = arith.index_cast %20 : i32 to index
      %c0_14 = arith.constant 0 : index
      %25 = vector.load %arg4[%24, %c0_14] : memref<4x128xf32, #tpu.memory_space<vmem>>, vector<1x128xf32>
      %26 = arith.addf %23, %25 : vector<1x128xf32>
      %c1_i32_15 = arith.constant 1 : i32
      %27 = arith.addi %13, %c1_i32_15 : i32
      %28 = arith.index_cast %27 : i32 to index
      %29 = memref.load %arg1[%28] : memref<440xi32, #tpu.memory_space<smem>>
      %c1_i32_16 = arith.constant 1 : i32
      %30 = arith.addi %13, %c1_i32_16 : i32
      %31 = arith.index_cast %30 : i32 to index
      %32 = memref.load %arg2[%31] : memref<440xi32, #tpu.memory_space<smem>>
      %33 = arith.index_cast %29 : i32 to index
      %c0_17 = arith.constant 0 : index
      %34 = vector.load %arg3[%33, %c0_17] : memref<33x128xf32, #tpu.memory_space<vmem>>, vector<1x128xf32>
      %35 = arith.addf %26, %34 : vector<1x128xf32>
      %36 = arith.index_cast %32 : i32 to index
      %c0_18 = arith.constant 0 : index
      %37 = vector.load %arg4[%36, %c0_18] : memref<4x128xf32, #tpu.memory_space<vmem>>, vector<1x128xf32>
      %38 = arith.addf %35, %37 : vector<1x128xf32>
      %c2_i32 = arith.constant 2 : i32
      %39 = arith.addi %13, %c2_i32 : i32
      %40 = arith.index_cast %39 : i32 to index
      %41 = memref.load %arg1[%40] : memref<440xi32, #tpu.memory_space<smem>>
      %c2_i32_19 = arith.constant 2 : i32
      %42 = arith.addi %13, %c2_i32_19 : i32
      %43 = arith.index_cast %42 : i32 to index
      %44 = memref.load %arg2[%43] : memref<440xi32, #tpu.memory_space<smem>>
      %45 = arith.index_cast %41 : i32 to index
      %c0_20 = arith.constant 0 : index
      %46 = vector.load %arg3[%45, %c0_20] : memref<33x128xf32, #tpu.memory_space<vmem>>, vector<1x128xf32>
      %47 = arith.addf %38, %46 : vector<1x128xf32>
      %48 = arith.index_cast %44 : i32 to index
      %c0_21 = arith.constant 0 : index
      %49 = vector.load %arg4[%48, %c0_21] : memref<4x128xf32, #tpu.memory_space<vmem>>, vector<1x128xf32>
      %50 = arith.addf %47, %49 : vector<1x128xf32>
      %c3_i32 = arith.constant 3 : i32
      %51 = arith.addi %13, %c3_i32 : i32
      %52 = arith.index_cast %51 : i32 to index
      %53 = memref.load %arg1[%52] : memref<440xi32, #tpu.memory_space<smem>>
      %c3_i32_22 = arith.constant 3 : i32
      %54 = arith.addi %13, %c3_i32_22 : i32
      %55 = arith.index_cast %54 : i32 to index
      %56 = memref.load %arg2[%55] : memref<440xi32, #tpu.memory_space<smem>>
      %57 = arith.index_cast %53 : i32 to index
      %c0_23 = arith.constant 0 : index
      %58 = vector.load %arg3[%57, %c0_23] : memref<33x128xf32, #tpu.memory_space<vmem>>, vector<1x128xf32>
      %59 = arith.addf %50, %58 : vector<1x128xf32>
      %60 = arith.index_cast %56 : i32 to index
      %c0_24 = arith.constant 0 : index
      %61 = vector.load %arg4[%60, %c0_24] : memref<4x128xf32, #tpu.memory_space<vmem>>, vector<1x128xf32>
      %62 = arith.addf %59, %61 : vector<1x128xf32>
      %c4_i32 = arith.constant 4 : i32
      %63 = arith.addi %13, %c4_i32 : i32
      %64 = arith.index_cast %63 : i32 to index
      %65 = memref.load %arg1[%64] : memref<440xi32, #tpu.memory_space<smem>>
      %c4_i32_25 = arith.constant 4 : i32
      %66 = arith.addi %13, %c4_i32_25 : i32
      %67 = arith.index_cast %66 : i32 to index
      %68 = memref.load %arg2[%67] : memref<440xi32, #tpu.memory_space<smem>>
      %69 = arith.index_cast %65 : i32 to index
      %c0_26 = arith.constant 0 : index
      %70 = vector.load %arg3[%69, %c0_26] : memref<33x128xf32, #tpu.memory_space<vmem>>, vector<1x128xf32>
      %71 = arith.addf %62, %70 : vector<1x128xf32>
      %72 = arith.index_cast %68 : i32 to index
      %c0_27 = arith.constant 0 : index
      %73 = vector.load %arg4[%72, %c0_27] : memref<4x128xf32, #tpu.memory_space<vmem>>, vector<1x128xf32>
      %74 = arith.addf %71, %73 : vector<1x128xf32>
      %c5_i32 = arith.constant 5 : i32
      %75 = arith.addi %13, %c5_i32 : i32
      %76 = arith.index_cast %75 : i32 to index
      %77 = memref.load %arg1[%76] : memref<440xi32, #tpu.memory_space<smem>>
      %c5_i32_28 = arith.constant 5 : i32
      %78 = arith.addi %13, %c5_i32_28 : i32
      %79 = arith.index_cast %78 : i32 to index
      %80 = memref.load %arg2[%79] : memref<440xi32, #tpu.memory_space<smem>>
      %81 = arith.index_cast %77 : i32 to index
      %c0_29 = arith.constant 0 : index
      %82 = vector.load %arg3[%81, %c0_29] : memref<33x128xf32, #tpu.memory_space<vmem>>, vector<1x128xf32>
      %83 = arith.addf %74, %82 : vector<1x128xf32>
      %84 = arith.index_cast %80 : i32 to index
      %c0_30 = arith.constant 0 : index
      %85 = vector.load %arg4[%84, %c0_30] : memref<4x128xf32, #tpu.memory_space<vmem>>, vector<1x128xf32>
      %86 = arith.addf %83, %85 : vector<1x128xf32>
      %c6_i32 = arith.constant 6 : i32
      %87 = arith.addi %13, %c6_i32 : i32
      %88 = arith.index_cast %87 : i32 to index
      %89 = memref.load %arg1[%88] : memref<440xi32, #tpu.memory_space<smem>>
      %c6_i32_31 = arith.constant 6 : i32
      %90 = arith.addi %13, %c6_i32_31 : i32
      %91 = arith.index_cast %90 : i32 to index
      %92 = memref.load %arg2[%91] : memref<440xi32, #tpu.memory_space<smem>>
      %93 = arith.index_cast %89 : i32 to index
      %c0_32 = arith.constant 0 : index
      %94 = vector.load %arg3[%93, %c0_32] : memref<33x128xf32, #tpu.memory_space<vmem>>, vector<1x128xf32>
      %95 = arith.addf %86, %94 : vector<1x128xf32>
      %96 = arith.index_cast %92 : i32 to index
      %c0_33 = arith.constant 0 : index
      %97 = vector.load %arg4[%96, %c0_33] : memref<4x128xf32, #tpu.memory_space<vmem>>, vector<1x128xf32>
      %98 = arith.addf %95, %97 : vector<1x128xf32>
      %c7_i32 = arith.constant 7 : i32
      %99 = arith.addi %13, %c7_i32 : i32
      %100 = arith.index_cast %99 : i32 to index
      %101 = memref.load %arg1[%100] : memref<440xi32, #tpu.memory_space<smem>>
      %c7_i32_34 = arith.constant 7 : i32
      %102 = arith.addi %13, %c7_i32_34 : i32
      %103 = arith.index_cast %102 : i32 to index
      %104 = memref.load %arg2[%103] : memref<440xi32, #tpu.memory_space<smem>>
      %105 = arith.index_cast %101 : i32 to index
      %c0_35 = arith.constant 0 : index
      %106 = vector.load %arg3[%105, %c0_35] : memref<33x128xf32, #tpu.memory_space<vmem>>, vector<1x128xf32>
      %107 = arith.addf %98, %106 : vector<1x128xf32>
      %108 = arith.index_cast %104 : i32 to index
      %c0_36 = arith.constant 0 : index
      %109 = vector.load %arg4[%108, %c0_36] : memref<4x128xf32, #tpu.memory_space<vmem>>, vector<1x128xf32>
      %110 = arith.addf %107, %109 : vector<1x128xf32>
      %c8_i32 = arith.constant 8 : i32
      %111 = arith.addi %13, %c8_i32 : i32
      %112 = arith.index_cast %111 : i32 to index
      %113 = memref.load %arg1[%112] : memref<440xi32, #tpu.memory_space<smem>>
      %c8_i32_37 = arith.constant 8 : i32
      %114 = arith.addi %13, %c8_i32_37 : i32
      %115 = arith.index_cast %114 : i32 to index
      %116 = memref.load %arg2[%115] : memref<440xi32, #tpu.memory_space<smem>>
      %117 = arith.index_cast %113 : i32 to index
      %c0_38 = arith.constant 0 : index
      %118 = vector.load %arg3[%117, %c0_38] : memref<33x128xf32, #tpu.memory_space<vmem>>, vector<1x128xf32>
      %119 = arith.addf %110, %118 : vector<1x128xf32>
      %120 = arith.index_cast %116 : i32 to index
      %c0_39 = arith.constant 0 : index
      %121 = vector.load %arg4[%120, %c0_39] : memref<4x128xf32, #tpu.memory_space<vmem>>, vector<1x128xf32>
      %122 = arith.addf %119, %121 : vector<1x128xf32>
      %c9_i32 = arith.constant 9 : i32
      %123 = arith.addi %13, %c9_i32 : i32
      %124 = arith.index_cast %123 : i32 to index
      %125 = memref.load %arg1[%124] : memref<440xi32, #tpu.memory_space<smem>>
      %c9_i32_40 = arith.constant 9 : i32
      %126 = arith.addi %13, %c9_i32_40 : i32
      %127 = arith.index_cast %126 : i32 to index
      %128 = memref.load %arg2[%127] : memref<440xi32, #tpu.memory_space<smem>>
      %129 = arith.index_cast %125 : i32 to index
      %c0_41 = arith.constant 0 : index
      %130 = vector.load %arg3[%129, %c0_41] : memref<33x128xf32, #tpu.memory_space<vmem>>, vector<1x128xf32>
      %131 = arith.addf %122, %130 : vector<1x128xf32>
      %132 = arith.index_cast %128 : i32 to index
      %c0_42 = arith.constant 0 : index
      %133 = vector.load %arg4[%132, %c0_42] : memref<4x128xf32, #tpu.memory_space<vmem>>, vector<1x128xf32>
      %134 = arith.addf %131, %133 : vector<1x128xf32>
      %c10_i32 = arith.constant 10 : i32
      %135 = arith.addi %13, %c10_i32 : i32
      %136 = arith.index_cast %135 : i32 to index
      %137 = memref.load %arg1[%136] : memref<440xi32, #tpu.memory_space<smem>>
      %c10_i32_43 = arith.constant 10 : i32
      %138 = arith.addi %13, %c10_i32_43 : i32
      %139 = arith.index_cast %138 : i32 to index
      %140 = memref.load %arg2[%139] : memref<440xi32, #tpu.memory_space<smem>>
      %141 = arith.index_cast %137 : i32 to index
      %c0_44 = arith.constant 0 : index
      %142 = vector.load %arg3[%141, %c0_44] : memref<33x128xf32, #tpu.memory_space<vmem>>, vector<1x128xf32>
      %143 = arith.addf %134, %142 : vector<1x128xf32>
      %144 = arith.index_cast %140 : i32 to index
      %c0_45 = arith.constant 0 : index
      %145 = vector.load %arg4[%144, %c0_45] : memref<4x128xf32, #tpu.memory_space<vmem>>, vector<1x128xf32>
      %146 = arith.addf %143, %145 : vector<1x128xf32>
      %c11_i32 = arith.constant 11 : i32
      %147 = arith.addi %13, %c11_i32 : i32
      %148 = arith.index_cast %147 : i32 to index
      %149 = memref.load %arg1[%148] : memref<440xi32, #tpu.memory_space<smem>>
      %c11_i32_46 = arith.constant 11 : i32
      %150 = arith.addi %13, %c11_i32_46 : i32
      %151 = arith.index_cast %150 : i32 to index
      %152 = memref.load %arg2[%151] : memref<440xi32, #tpu.memory_space<smem>>
      %153 = arith.index_cast %149 : i32 to index
      %c0_47 = arith.constant 0 : index
      %154 = vector.load %arg3[%153, %c0_47] : memref<33x128xf32, #tpu.memory_space<vmem>>, vector<1x128xf32>
      %155 = arith.addf %146, %154 : vector<1x128xf32>
      %156 = arith.index_cast %152 : i32 to index
      %c0_48 = arith.constant 0 : index
      %157 = vector.load %arg4[%156, %c0_48] : memref<4x128xf32, #tpu.memory_space<vmem>>, vector<1x128xf32>
      %158 = arith.addf %155, %157 : vector<1x128xf32>
      %c12_i32 = arith.constant 12 : i32
      %159 = arith.addi %13, %c12_i32 : i32
      %160 = arith.index_cast %159 : i32 to index
      %161 = memref.load %arg1[%160] : memref<440xi32, #tpu.memory_space<smem>>
      %c12_i32_49 = arith.constant 12 : i32
      %162 = arith.addi %13, %c12_i32_49 : i32
      %163 = arith.index_cast %162 : i32 to index
      %164 = memref.load %arg2[%163] : memref<440xi32, #tpu.memory_space<smem>>
      %165 = arith.index_cast %161 : i32 to index
      %c0_50 = arith.constant 0 : index
      %166 = vector.load %arg3[%165, %c0_50] : memref<33x128xf32, #tpu.memory_space<vmem>>, vector<1x128xf32>
      %167 = arith.addf %158, %166 : vector<1x128xf32>
      %168 = arith.index_cast %164 : i32 to index
      %c0_51 = arith.constant 0 : index
      %169 = vector.load %arg4[%168, %c0_51] : memref<4x128xf32, #tpu.memory_space<vmem>>, vector<1x128xf32>
      %170 = arith.addf %167, %169 : vector<1x128xf32>
      %c13_i32 = arith.constant 13 : i32
      %171 = arith.addi %13, %c13_i32 : i32
      %172 = arith.index_cast %171 : i32 to index
      %173 = memref.load %arg1[%172] : memref<440xi32, #tpu.memory_space<smem>>
      %c13_i32_52 = arith.constant 13 : i32
      %174 = arith.addi %13, %c13_i32_52 : i32
      %175 = arith.index_cast %174 : i32 to index
      %176 = memref.load %arg2[%175] : memref<440xi32, #tpu.memory_space<smem>>
      %177 = arith.index_cast %173 : i32 to index
      %c0_53 = arith.constant 0 : index
      %178 = vector.load %arg3[%177, %c0_53] : memref<33x128xf32, #tpu.memory_space<vmem>>, vector<1x128xf32>
      %179 = arith.addf %170, %178 : vector<1x128xf32>
      %180 = arith.index_cast %176 : i32 to index
      %c0_54 = arith.constant 0 : index
      %181 = vector.load %arg4[%180, %c0_54] : memref<4x128xf32, #tpu.memory_space<vmem>>, vector<1x128xf32>
      %182 = arith.addf %179, %181 : vector<1x128xf32>
      %c14_i32 = arith.constant 14 : i32
      %183 = arith.addi %13, %c14_i32 : i32
      %184 = arith.index_cast %183 : i32 to index
      %185 = memref.load %arg1[%184] : memref<440xi32, #tpu.memory_space<smem>>
      %c14_i32_55 = arith.constant 14 : i32
      %186 = arith.addi %13, %c14_i32_55 : i32
      %187 = arith.index_cast %186 : i32 to index
      %188 = memref.load %arg2[%187] : memref<440xi32, #tpu.memory_space<smem>>
      %189 = arith.index_cast %185 : i32 to index
      %c0_56 = arith.constant 0 : index
      %190 = vector.load %arg3[%189, %c0_56] : memref<33x128xf32, #tpu.memory_space<vmem>>, vector<1x128xf32>
      %191 = arith.addf %182, %190 : vector<1x128xf32>
      %192 = arith.index_cast %188 : i32 to index
      %c0_57 = arith.constant 0 : index
      %193 = vector.load %arg4[%192, %c0_57] : memref<4x128xf32, #tpu.memory_space<vmem>>, vector<1x128xf32>
      %194 = arith.addf %191, %193 : vector<1x128xf32>
      %c15_i32 = arith.constant 15 : i32
      %195 = arith.addi %13, %c15_i32 : i32
      %196 = arith.index_cast %195 : i32 to index
      %197 = memref.load %arg1[%196] : memref<440xi32, #tpu.memory_space<smem>>
      %c15_i32_58 = arith.constant 15 : i32
      %198 = arith.addi %13, %c15_i32_58 : i32
      %199 = arith.index_cast %198 : i32 to index
      %200 = memref.load %arg2[%199] : memref<440xi32, #tpu.memory_space<smem>>
      %201 = arith.index_cast %197 : i32 to index
      %c0_59 = arith.constant 0 : index
      %202 = vector.load %arg3[%201, %c0_59] : memref<33x128xf32, #tpu.memory_space<vmem>>, vector<1x128xf32>
      %203 = arith.addf %194, %202 : vector<1x128xf32>
      %204 = arith.index_cast %200 : i32 to index
      %c0_60 = arith.constant 0 : index
      %205 = vector.load %arg4[%204, %c0_60] : memref<4x128xf32, #tpu.memory_space<vmem>>, vector<1x128xf32>
      %206 = arith.addf %203, %205 : vector<1x128xf32>
      %c16_i32 = arith.constant 16 : i32
      %207 = arith.addi %13, %c16_i32 : i32
      %208 = arith.index_cast %207 : i32 to index
      %209 = memref.load %arg1[%208] : memref<440xi32, #tpu.memory_space<smem>>
      %c16_i32_61 = arith.constant 16 : i32
      %210 = arith.addi %13, %c16_i32_61 : i32
      %211 = arith.index_cast %210 : i32 to index
      %212 = memref.load %arg2[%211] : memref<440xi32, #tpu.memory_space<smem>>
      %213 = arith.index_cast %209 : i32 to index
      %c0_62 = arith.constant 0 : index
      %214 = vector.load %arg3[%213, %c0_62] : memref<33x128xf32, #tpu.memory_space<vmem>>, vector<1x128xf32>
      %215 = arith.addf %206, %214 : vector<1x128xf32>
      %216 = arith.index_cast %212 : i32 to index
      %c0_63 = arith.constant 0 : index
      %217 = vector.load %arg4[%216, %c0_63] : memref<4x128xf32, #tpu.memory_space<vmem>>, vector<1x128xf32>
      %218 = arith.addf %215, %217 : vector<1x128xf32>
      %c17_i32 = arith.constant 17 : i32
      %219 = arith.addi %13, %c17_i32 : i32
      %220 = arith.index_cast %219 : i32 to index
      %221 = memref.load %arg1[%220] : memref<440xi32, #tpu.memory_space<smem>>
      %c17_i32_64 = arith.constant 17 : i32
      %222 = arith.addi %13, %c17_i32_64 : i32
      %223 = arith.index_cast %222 : i32 to index
      %224 = memref.load %arg2[%223] : memref<440xi32, #tpu.memory_space<smem>>
      %225 = arith.index_cast %221 : i32 to index
      %c0_65 = arith.constant 0 : index
      %226 = vector.load %arg3[%225, %c0_65] : memref<33x128xf32, #tpu.memory_space<vmem>>, vector<1x128xf32>
      %227 = arith.addf %218, %226 : vector<1x128xf32>
      %228 = arith.index_cast %224 : i32 to index
      %c0_66 = arith.constant 0 : index
      %229 = vector.load %arg4[%228, %c0_66] : memref<4x128xf32, #tpu.memory_space<vmem>>, vector<1x128xf32>
      %230 = arith.addf %227, %229 : vector<1x128xf32>
      %c18_i32 = arith.constant 18 : i32
      %231 = arith.addi %13, %c18_i32 : i32
      %232 = arith.index_cast %231 : i32 to index
      %233 = memref.load %arg1[%232] : memref<440xi32, #tpu.memory_space<smem>>
      %c18_i32_67 = arith.constant 18 : i32
      %234 = arith.addi %13, %c18_i32_67 : i32
      %235 = arith.index_cast %234 : i32 to index
      %236 = memref.load %arg2[%235] : memref<440xi32, #tpu.memory_space<smem>>
      %237 = arith.index_cast %233 : i32 to index
      %c0_68 = arith.constant 0 : index
      %238 = vector.load %arg3[%237, %c0_68] : memref<33x128xf32, #tpu.memory_space<vmem>>, vector<1x128xf32>
      %239 = arith.addf %230, %238 : vector<1x128xf32>
      %240 = arith.index_cast %236 : i32 to index
      %c0_69 = arith.constant 0 : index
      %241 = vector.load %arg4[%240, %c0_69] : memref<4x128xf32, #tpu.memory_space<vmem>>, vector<1x128xf32>
      %242 = arith.addf %239, %241 : vector<1x128xf32>
      %c19_i32 = arith.constant 19 : i32
      %243 = arith.addi %13, %c19_i32 : i32
      %244 = arith.index_cast %243 : i32 to index
      %245 = memref.load %arg1[%244] : memref<440xi32, #tpu.memory_space<smem>>
      %c19_i32_70 = arith.constant 19 : i32
      %246 = arith.addi %13, %c19_i32_70 : i32
      %247 = arith.index_cast %246 : i32 to index
      %248 = memref.load %arg2[%247] : memref<440xi32, #tpu.memory_space<smem>>
      %249 = arith.index_cast %245 : i32 to index
      %c0_71 = arith.constant 0 : index
      %250 = vector.load %arg3[%249, %c0_71] : memref<33x128xf32, #tpu.memory_space<vmem>>, vector<1x128xf32>
      %251 = arith.addf %242, %250 : vector<1x128xf32>
      %252 = arith.index_cast %248 : i32 to index
      %c0_72 = arith.constant 0 : index
      %253 = vector.load %arg4[%252, %c0_72] : memref<4x128xf32, #tpu.memory_space<vmem>>, vector<1x128xf32>
      %254 = arith.addf %251, %253 : vector<1x128xf32>
      %c6_i32_73 = arith.constant 6 : i32
      %255 = arith.cmpi slt, %12, %c6_i32_73 : i32
      %cst_74 = arith.constant 2.000000e-01 : f32
      %cst_75 = arith.constant 5.000000e-02 : f32
      %256 = arith.select %255, %cst_74, %cst_75 : f32
      %257 = vector.broadcast %256 : f32 to vector<1x128xf32>
      %258 = arith.mulf %254, %257 : vector<1x128xf32>
      %259 = arith.index_cast %arg7 : i32 to index
      %c0_76 = arith.constant 0 : index
      %260 = vector.load %arg6[%259, %c0_76] : memref<256x128xf32, #tpu.memory_space<vmem>>, vector<1x128xf32>
      tpu.vector_store %arg6[%259, %c0_76], %258 {strides = array<i32>} : memref<256x128xf32, #tpu.memory_space<vmem>>, vector<1x128xf32>,
    }
    %c0_4 = arith.constant 0 : index
    %c0_5 = arith.constant 0 : index
    %8 = vector.load %arg6[%c0_4, %c0_5] : memref<256x128xf32, #tpu.memory_space<vmem>>, vector<256x128xf32>
    %c0_6 = arith.constant 0 : index
    %c0_7 = arith.constant 0 : index
    %9 = vector.load %arg5[%c0_6, %c0_7] : memref<256x128xf32, #tpu.memory_space<vmem>>, vector<256x128xf32>
    %10 = arith.addf %8, %9 : vector<256x128xf32>
    %c0_8 = arith.constant 0 : index
    %c0_9 = arith.constant 0 : index
    %11 = vector.load %arg6[%c0_8, %c0_9] : memref<256x128xf32, #tpu.memory_space<vmem>>, vector<256x128xf32>
    tpu.vector_store %arg6[%c0_8, %c0_9], %10 {strides = array<i32>} : memref<256x128xf32, #tpu.memory_space<vmem>>, vector<256x128xf32>,
    return
  }
  func.func @transform_0(%arg0: i32, %arg1: memref<440xi32, #tpu.memory_space<smem>>, %arg2: memref<440xi32, #tpu.memory_space<smem>>) -> (i32, i32) {
    %c0_i32 = arith.constant 0 : i32
    %c0_i32_0 = arith.constant 0 : i32
    %c0_i32_1 = arith.constant 0 : i32
    return %c0_i32, %c0_i32_0 : i32, i32
  }
  func.func @transform_1(%arg0: i32, %arg1: memref<440xi32, #tpu.memory_space<smem>>, %arg2: memref<440xi32, #tpu.memory_space<smem>>) -> (i32, i32) {
    %c0_i32 = arith.constant 0 : i32
    %c0_i32_0 = arith.constant 0 : i32
    %c0_i32_1 = arith.constant 0 : i32
    return %c0_i32, %c0_i32_0 : i32, i32
  }
  func.func @transform_2(%arg0: i32, %arg1: memref<440xi32, #tpu.memory_space<smem>>, %arg2: memref<440xi32, #tpu.memory_space<smem>>) -> (i32, i32) {
    %c0_i32 = arith.constant 0 : i32
    %c0_i32_0 = arith.constant 0 : i32
    return %arg0, %c0_i32 : i32, i32
  }
  func.func @transform_3(%arg0: i32, %arg1: memref<440xi32, #tpu.memory_space<smem>>, %arg2: memref<440xi32, #tpu.memory_space<smem>>) -> (i32, i32) {
    %c0_i32 = arith.constant 0 : i32
    %c0_i32_0 = arith.constant 0 : i32
    return %arg0, %c0_i32 : i32, i32
  }
}

</mosaic_0001>

<bundles_post_ra>
// kernel: aggregator_forward.2
= control target key start
LH: loop header
LB: loop body
LE: loop exit
PB: predicated region body
PF: predicated region fallthrough
CT: control target
= control target key end

     0   :  { %s1098_s0 = inlined_call_operand.vmem [shape: s32[440], index: 0, kind: input, shape index: {}]   ;;  %s1099_s2 = inlined_call_operand.vmem [shape: f32[33,128], index: 2, kind: input, shape index: {}]   ;;  %s1100_s3 = inlined_call_operand.vmem [shape: f32[4,128], index: 3, kind: input, shape index: {}]   ;;  %s1101_s4 = inlined_call_operand.vmem [shape: f32[512,128], index: 4, kind: input, shape index: {}]   ;;  %s1102_s5 = inlined_call_operand.vmem [shape: f32[512,128], index: 5, kind: output, shape index: {}]   ;;  %s1103_s1 = inlined_call_operand.vmem [shape: s32[440], index: 1, kind: input, shape index: {}]  }
   0x1   :  { %1104 = sst [smem:[#allocation6_spill]] %s1101_s4  ;;  %s10_s20 = sshll.u32 %s1098_s0, 4  ;;  %s11_s20 = int_to_ptr.vmem [resolvable:$true] %s10_s20 }
   0x2   :  { %1105 = sst [smem:[#allocation7_spill]] %s1102_s5  ;;  %s14_s23 = sshll.u32 %s1103_s1, 4  ;;  %s15_s23 = int_to_ptr.vmem [resolvable:$true] %s14_s23 }
   0x3   :  { %s686_s24 = scalar_lea.vmem %s11_s20, 64  ;;  %p691_p1 = scmp.lt.s32.totalorder %s11_s20, %s11_s20 }
   0x4   :  { %p687_p0 = scmp.ne.s32.totalorder %s11_s20, %s686_s24  ;;  %p692_p2 = scmp.lt.s32.totalorder %s686_s24, %s686_s24 }
   0x6   :  { %p693_p3 = por %p692_p2, %p691_p1 }
   0x8   :  { %p694_p4 = pnand %p693_p3, %p687_p0 }
   0xa   :  { %697 = shalt.err (!%p694_p4)  }
   0xb   :  { %s728_s25 = smov [#allocation3]   ;;  %s698_s26 = scalar_lea.vmem %s15_s23, 64 }
   0xc   :  { %13 = dma.vmem_to_smem %s11_s20, 64, %s728_s25, [#allocation2] }
   0xd   :  { %p699_p5 = scmp.ne.s32.totalorder %s15_s23, %s698_s26  ;;  %p703_p6 = scmp.lt.s32.totalorder %s15_s23, %s15_s23 }
   0xe   :  { %p704_p7 = scmp.lt.s32.totalorder %s698_s26, %s698_s26 }
  0x10   :  { %p705_p8 = por %p704_p7, %p703_p6 }
  0x12   :  { %p706_p9 = pnand %p705_p8, %p699_p5 }
  0x14   :  { %709 = shalt.err (!%p706_p9)  }
  0x15   :  { %s729_s0 = smov [#allocation4]  }
  0x16   :  { %17 = dma.vmem_to_smem %s15_s23, 64, %s729_s0, [#allocation2] }
  0x17   :  { %718 = dma.done.wait [#allocation2], 128 }
  0x18   :  { %719 = vsyncadd [#allocation2], 4294967168 }
  0x19   :  { %19 = sfence }
  0x1a   :  { %s767_s1 = smov 0  }
  0x1b LB: > { %s647_s27 = sadd.s32 4294967295, %s722_s1   ;;  %p651_p10 = scmp.ge.s32.totalorder %s722_s1, 1  ;;  %s722_s1 = sphi %s767_s1, %s25_s1  }
  0x1c   : > { %p150_p11 = scmp.lt.s32.totalorder %s722_s1, 3 }
  0x1e   : > { %p151_p12 = pnand %p651_p10, %p150_p11 }
  0x1f   : > { %s652_s28 = sshll.u32 (!%p151_p12), %s647_s27, 5  ;;  %s775_s29 = sshll.u32 (!%p151_p12), %s647_s27, 8  ;;  %v730_v0 = vmov (!%p151_p12), 0.0  }
  0x20   : > { %154 = sbr.rel (%p151_p12) target bundleno = 181 (0xb5), region = 32  ;;  %p175_p13 = scmp.lt.s32.totalorder (!%p151_p12), %s652_s28, 63 }
  0x21   : > { %s778_s30 = ssub.s32 (!%p151_p12), 22, %s775_s29  ;;  %s1106_s4 = sld [smem:[#allocation6_spill]] (!%p151_p12) }
  0x22   : > { %p220_p0 = scmp.gt.s32.totalorder (!%p151_p12), %s778_s30, 0  ;;  %p657_p1 = scmp.lt.s32.totalorder (!%p151_p12), %s778_s30, 256 }
  0x23   : > { %s1107_s5 = sld [smem:[#allocation7_spill]] (!%p151_p12) }
  0x27   : > { %s1109_s28 = smov (!%p175_p13, %s652_s28), 63 }
  0x28   : > { %s783_s6 = scalar_select %p220_p0, %s778_s30, 0 }
  0x29   : > { %s653_s7 = sshll.u32 %s1109_s28, 3 }
  0x2a   : > { %s788_s10 = scalar_lea.vmem %s1106_s4, %s653_s7  ;;  %s793_s13 = scalar_lea.vmem %s1107_s5, %s653_s7 }
  0x2b   : > { %187 = vst [vmem:[%s793_s13] sm:$0xff] %v730_v0  ;;  %188 = vst [vmem:[%s793_s13 + $0x8] sm:$0xff] %v730_v0  ;;  %s1111_s6 = smov (!%p657_p1, %s783_s6), 256 }
  0x2c   : > { %189 = vst [vmem:[%s793_s13 + $0x10] sm:$0xff] %v730_v0  ;;  %190 = vst [vmem:[%s793_s13 + $0x18] sm:$0xff] %v730_v0  ;;  %p662_p2 = scmp.le.s32.totalorder %s1111_s6, 0 }
  0x2d   : > { %191 = vst [vmem:[%s793_s13 + $0x20] sm:$0xff] %v730_v0  ;;  %192 = vst [vmem:[%s793_s13 + $0x28] sm:$0xff] %v730_v0  ;;  %s833_s14 = smov (!%p662_p2), 0  }
  0x2e   : > { %193 = vst [vmem:[%s793_s13 + $0x30] sm:$0xff] %v730_v0  ;;  %194 = vst [vmem:[%s793_s13 + $0x38] sm:$0xff] %v730_v0 }
  0x2f   : > { %195 = vst [vmem:[%s793_s13 + $0x40] sm:$0xff] %v730_v0  ;;  %196 = vst [vmem:[%s793_s13 + $0x48] sm:$0xff] %v730_v0 }
  0x30   : > { %197 = vst [vmem:[%s793_s13 + $0x50] sm:$0xff] %v730_v0  ;;  %198 = vst [vmem:[%s793_s13 + $0x58] sm:$0xff] %v730_v0 }
  0x31   : > { %199 = vst [vmem:[%s793_s13 + $0x60] sm:$0xff] %v730_v0  ;;  %200 = vst [vmem:[%s793_s13 + $0x68] sm:$0xff] %v730_v0 }
  0x32   : > { %201 = vst [vmem:[%s793_s13 + $0x70] sm:$0xff] %v730_v0  ;;  %202 = vst [vmem:[%s793_s13 + $0x78] sm:$0xff] %v730_v0 }
  0x33   : > { %203 = vst [vmem:[%s793_s13 + $0x80] sm:$0xff] %v730_v0  ;;  %204 = vst [vmem:[%s793_s13 + $0x88] sm:$0xff] %v730_v0 }
  0x34   : > { %205 = vst [vmem:[%s793_s13 + $0x90] sm:$0xff] %v730_v0  ;;  %206 = vst [vmem:[%s793_s13 + $0x98] sm:$0xff] %v730_v0  ;;  %624 = sbr.rel (%p662_p2) target bundleno = 152 (0x98), region = 104 }
  0x35   : > { %207 = vst [vmem:[%s793_s13 + $0xa0] sm:$0xff] %v730_v0  ;;  %208 = vst [vmem:[%s793_s13 + $0xa8] sm:$0xff] %v730_v0 }
  0x36   : > { %209 = vst [vmem:[%s793_s13 + $0xb0] sm:$0xff] %v730_v0  ;;  %210 = vst [vmem:[%s793_s13 + $0xb8] sm:$0xff] %v730_v0 }
  0x37   : > { %211 = vst [vmem:[%s793_s13 + $0xc0] sm:$0xff] %v730_v0  ;;  %212 = vst [vmem:[%s793_s13 + $0xc8] sm:$0xff] %v730_v0 }
  0x38   : > { %213 = vst [vmem:[%s793_s13 + $0xd0] sm:$0xff] %v730_v0  ;;  %214 = vst [vmem:[%s793_s13 + $0xd8] sm:$0xff] %v730_v0 }
  0x39   : > { %215 = vst [vmem:[%s793_s13 + $0xe0] sm:$0xff] %v730_v0  ;;  %216 = vst [vmem:[%s793_s13 + $0xe8] sm:$0xff] %v730_v0 }
  0x3a   : > { %217 = vst [vmem:[%s793_s13 + $0xf0] sm:$0xff] %v730_v0  ;;  %218 = vst [vmem:[%s793_s13 + $0xf8] sm:$0xff] %v730_v0 }
  0x3b LB: >> { %s840_s15 = sadd.s32 %s726_s14, %s775_s29  ;;  %s726_s14 = sphi %s833_s14, %s227_s14  }
  0x3c   : >> { %s843_s16 = smul.u32 20, %s840_s15  ;;  %p411_p3 = scmp.lt.s32.totalorder %s840_s15, 6 }
  0x3e   : >> { %s232_s17 = sld [smem:[#allocation3 + %s843_s16]]  ;;  %s240_s19 = sadd.s32 1, %s843_s16 }
  0x3f   : >> { %s233_s18 = sld [smem:[#allocation4 + %s843_s16]]  ;;  %s249_s20 = sadd.s32 2, %s843_s16 }
  0x40   : >> { %s241_s21 = sld [smem:[#allocation3 + %s240_s19]]  ;;  %s258_s25 = sadd.s32 3, %s843_s16 }
  0x41   : >> { %s242_s22 = sld [smem:[#allocation4 + %s240_s19]]  ;;  %s267_s26 = sadd.s32 4, %s843_s16 }
  0x42   : >> { %s250_s23 = sld [smem:[#allocation3 + %s249_s20]]  ;;  %s294_s8 = sadd.s32 7, %s843_s16 }
  0x43   : >> { %s251_s24 = sld [smem:[#allocation4 + %s249_s20]]  ;;  %s285_s20 = sadd.s32 6, %s843_s16 }
  0x44   : >> { %s259_s0 = sld [smem:[#allocation3 + %s258_s25]]  ;;  %s234_s7 = scalar_lea.vmem %s1099_s2, %s232_s17 }
  0x45   : >> { %s851_s27 = sld [smem:[#allocation4 + %s258_s25]]  ;;  %s237_s11 = scalar_lea.vmem %s1100_s3, %s233_s18  ;;  %v235_v1 = vld [vmem:[%s234_s7] sm:$0x1] }
  0x46   : >> { %v238_v2 = vld [vmem:[%s237_s11] sm:$0x1]  ;;  %s859_s12 = sld [smem:[#allocation3 + %s267_s26]]  ;;  %s243_s4 = scalar_lea.vmem %s1099_s2, %s241_s21 }
  0x47   : >> { %v239_v3 = vadd.f32 %v238_v2, %v235_v1  ;;  %s246_s28 = scalar_lea.vmem %s1100_s3, %s242_s22  ;;  %v244_v4 = vld [vmem:[%s243_s4] sm:$0x1]  ;;  %s269_s7 = sld [smem:[#allocation4 + %s267_s26]] }
  0x48   : >> { %v247_v5 = vld [vmem:[%s246_s28] sm:$0x1]  ;;  %s252_s18 = scalar_lea.vmem %s1099_s2, %s250_s23  ;;  %s276_s21 = sadd.s32 5, %s843_s16 }
  0x49   : >> { %v245_v6 = vadd.f32 %v244_v4, %v239_v3  ;;  %s255_s11 = scalar_lea.vmem %s1100_s3, %s251_s24  ;;  %v253_v7 = vld [vmem:[%s252_s18] sm:$0x1]  ;;  %s277_s22 = sld [smem:[#allocation3 + %s276_s21]] }
  0x4a   : >> { %s261_s4 = scalar_lea.vmem %s1099_s2, %s259_s0  ;;  %v256_v9 = vld [vmem:[%s255_s11] sm:$0x1]  ;;  %s278_s28 = sld [smem:[#allocation4 + %s276_s21]] }
  0x4b   : >> { %v248_v8 = vadd.f32 %v247_v5, %v245_v6  ;;  %s264_s26 = scalar_lea.vmem %s1100_s3, %s851_s27  ;;  %v262_v11 = vld [vmem:[%s261_s4] sm:$0x1]  ;;  %s286_s18 = sld [smem:[#allocation3 + %s285_s20]] }
  0x4c   : >> { %s270_s30 = scalar_lea.vmem %s1099_s2, %s859_s12  ;;  %v265_v13 = vld [vmem:[%s264_s26] sm:$0x1]  ;;  %s287_s5 = sld [smem:[#allocation4 + %s285_s20]] }
  0x4d   : >> { %v254_v10 = vadd.f32 %v253_v7, %v248_v8  ;;  %s273_s11 = scalar_lea.vmem %s1100_s3, %s269_s7  ;;  %v271_v15 = vld [vmem:[%s270_s30] sm:$0x1]  ;;  %s295_s4 = sld [smem:[#allocation3 + %s294_s8]] }
  0x4e   : >> { %v274_v17 = vld [vmem:[%s273_s11] sm:$0x1]  ;;  %s303_s23 = sadd.s32 8, %s843_s16  ;;  %s296_s24 = sld [smem:[#allocation4 + %s294_s8]] }
  0x4f   : >> { %v257_v12 = vadd.f32 %v256_v9, %v254_v10  ;;  %s279_s19 = scalar_lea.vmem %s1099_s2, %s277_s22  ;;  %s304_s30 = sld [smem:[#allocation3 + %s303_s23]] }
  0x50   : >> { %s282_s26 = scalar_lea.vmem %s1100_s3, %s278_s28  ;;  %v280_v19 = vld [vmem:[%s279_s19] sm:$0x1]  ;;  %s312_s0 = sadd.s32 9, %s843_s16 }
  0x51   : >> { %v263_v14 = vadd.f32 %v262_v11, %v257_v12  ;;  %s288_s17 = scalar_lea.vmem %s1099_s2, %s286_s18  ;;  %v283_v21 = vld [vmem:[%s282_s26] sm:$0x1]  ;;  %s305_s27 = sld [smem:[#allocation4 + %s303_s23]] }
  0x52   : >> { %s291_s11 = scalar_lea.vmem %s1100_s3, %s287_s5  ;;  %v289_v23 = vld [vmem:[%s288_s17] sm:$0x1]  ;;  %s313_s19 = sld [smem:[#allocation3 + %s312_s0]] }
  0x53   : >> { %v266_v16 = vadd.f32 %v265_v13, %v263_v14  ;;  %s297_s21 = scalar_lea.vmem %s1099_s2, %s295_s4  ;;  %v292_v25 = vld [vmem:[%s291_s11] sm:$0x1]  ;;  %s321_s12 = sadd.s32 10, %s843_s16 }
  0x54   : >> { %s300_s26 = scalar_lea.vmem %s1100_s3, %s296_s24  ;;  %s314_s7 = sld [smem:[#allocation4 + %s312_s0]]  ;;  %v298_v27 = vld [vmem:[%s297_s21] sm:$0x1] }
  0x55   : >> { %v272_v18 = vadd.f32 %v271_v15, %v266_v16  ;;  %s306_s20 = scalar_lea.vmem %s1099_s2, %s304_s30  ;;  %s322_s17 = sld [smem:[#allocation3 + %s321_s12]]  ;;  %v301_v29 = vld [vmem:[%s300_s26] sm:$0x1] }
  0x56   : >> { %s330_s22 = sadd.s32 11, %s843_s16  ;;  %s323_s28 = sld [smem:[#allocation4 + %s321_s12]]  ;;  %v307_v31 = vld [vmem:[%s306_s20] sm:$0x1] }
  0x57   : >> { %v275_v20 = vadd.f32 %v274_v17, %v272_v18  ;;  %s309_s11 = scalar_lea.vmem %s1100_s3, %s305_s27  ;;  %s331_s21 = sld [smem:[#allocation3 + %s330_s22]] }
  0x58   : >> { %s315_s8 = scalar_lea.vmem %s1099_s2, %s313_s19  ;;  %v310_v33 = vld [vmem:[%s309_s11] sm:$0x1]  ;;  %s339_s18 = sadd.s32 12, %s843_s16 }
  0x59   : >> { %v281_v22 = vadd.f32 %v280_v19, %v275_v20  ;;  %s332_s5 = sld [smem:[#allocation4 + %s330_s22]]  ;;  %v316_v35 = vld [vmem:[%s315_s8] sm:$0x1]  ;;  %s348_s4 = sadd.s32 13, %s843_s16 }
  0x5a   : >> { %s318_s26 = scalar_lea.vmem %s1100_s3, %s314_s7  ;;  %s340_s20 = sld [smem:[#allocation3 + %s339_s18]] }
  0x5b   : >> { %v284_v24 = vadd.f32 %v283_v21, %v281_v22  ;;  %s324_s23 = scalar_lea.vmem %s1099_s2, %s322_s17  ;;  %v319_v37 = vld [vmem:[%s318_s26] sm:$0x1]  ;;  %s341_s24 = sld [smem:[#allocation4 + %s339_s18]] }
  0x5c   : >> { %s327_s11 = scalar_lea.vmem %s1100_s3, %s323_s28  ;;  %v325_v39 = vld [vmem:[%s324_s23] sm:$0x1]  ;;  %s349_s8 = sld [smem:[#allocation3 + %s348_s4]] }
  0x5d   : >> { %v290_v26 = vadd.f32 %v289_v23, %v284_v24  ;;  %s333_s0 = scalar_lea.vmem %s1099_s2, %s331_s21  ;;  %v328_v41 = vld [vmem:[%s327_s11] sm:$0x1]  ;;  %s357_s30 = sadd.s32 14, %s843_s16 }
  0x5e   : >> { %s350_s27 = sld [smem:[#allocation4 + %s348_s4]]  ;;  %v334_v43 = vld [vmem:[%s333_s0] sm:$0x1]  ;;  %s366_s19 = sadd.s32 15, %s843_s16 }
  0x5f   : >> { %v293_v28 = vadd.f32 %v292_v25, %v290_v26  ;;  %s336_s26 = scalar_lea.vmem %s1100_s3, %s332_s5  ;;  %s358_s23 = sld [smem:[#allocation3 + %s357_s30]] }
  0x60   : >> { %s342_s12 = scalar_lea.vmem %s1099_s2, %s340_s20  ;;  %v337_v45 = vld [vmem:[%s336_s26] sm:$0x1]  ;;  %s359_s7 = sld [smem:[#allocation4 + %s357_s30]] }
  0x61   : >> { %v299_v30 = vadd.f32 %v298_v27, %v293_v28  ;;  %s345_s11 = scalar_lea.vmem %s1100_s3, %s341_s24  ;;  %v343_v47 = vld [vmem:[%s342_s12] sm:$0x1]  ;;  %s367_s0 = sld [smem:[#allocation3 + %s366_s19]] }
  0x62   : >> { %s351_s22 = scalar_lea.vmem %s1099_s2, %s349_s8  ;;  %v346_v49 = vld [vmem:[%s345_s11] sm:$0x1]  ;;  %s375_s17 = sadd.s32 16, %s843_s16 }
  0x63   : >> { %v302_v32 = vadd.f32 %v301_v29, %v299_v30  ;;  %s368_s28 = sld [smem:[#allocation4 + %s366_s19]]  ;;  %v352_v51 = vld [vmem:[%s351_s22] sm:$0x1]  ;;  %s384_s21 = sadd.s32 17, %s843_s16 }
  0x64   : >> { %s354_s26 = scalar_lea.vmem %s1100_s3, %s350_s27  ;;  %s376_s12 = sld [smem:[#allocation3 + %s375_s17]] }
  0x65   : >> { %v308_v34 = vadd.f32 %v307_v31, %v302_v32  ;;  %s360_s18 = scalar_lea.vmem %s1099_s2, %s358_s23  ;;  %v355_v53 = vld [vmem:[%s354_s26] sm:$0x1]  ;;  %s377_s5 = sld [smem:[#allocation4 + %s375_s17]] }
  0x66   : >> { %s363_s11 = scalar_lea.vmem %s1100_s3, %s359_s7  ;;  %v361_v55 = vld [vmem:[%s360_s18] sm:$0x1]  ;;  %s385_s22 = sld [smem:[#allocation3 + %s384_s21]] }
  0x67   : >> { %v311_v36 = vadd.f32 %v310_v33, %v308_v34  ;;  %s369_s4 = scalar_lea.vmem %s1099_s2, %s367_s0  ;;  %v364_v57 = vld [vmem:[%s363_s11] sm:$0x1]  ;;  %s393_s20 = sadd.s32 18, %s843_s16 }
  0x68   : >> { %s386_s24 = sld [smem:[#allocation4 + %s384_s21]]  ;;  %v370_v59 = vld [vmem:[%s369_s4] sm:$0x1]  ;;  %s402_s8 = sadd.s32 19, %s843_s16 }
  0x69   : >> { %v317_v38 = vadd.f32 %v316_v35, %v311_v36  ;;  %s372_s26 = scalar_lea.vmem %s1100_s3, %s368_s28  ;;  %s394_s18 = sld [smem:[#allocation3 + %s393_s20]] }
  0x6a   : >> { %s378_s17 = scalar_lea.vmem %s1099_s2, %s376_s12  ;;  %v373_v61 = vld [vmem:[%s372_s26] sm:$0x1]  ;;  %s395_s27 = sld [smem:[#allocation4 + %s393_s20]] }
  0x6b   : >> { %v320_v40 = vadd.f32 %v319_v37, %v317_v38  ;;  %s381_s11 = scalar_lea.vmem %s1100_s3, %s377_s5  ;;  %v379_v63 = vld [vmem:[%s378_s17] sm:$0x1]  ;;  %s403_s4 = sld [smem:[#allocation3 + %s402_s8]] }
  0x6c   : >> { %s387_s19 = scalar_lea.vmem %s1099_s2, %s385_s22  ;;  %v382_v1 = vld [vmem:[%s381_s11] sm:$0x1]  ;;  %s404_s25 = sld [smem:[#allocation4 + %s402_s8]] }
  0x6d   : >> { %v326_v42 = vadd.f32 %v325_v39, %v320_v40  ;;  %v388_v3 = vld [vmem:[%s387_s19] sm:$0x1]  ;;  %s412_s11 = scalar_select %p411_p3, 0.2, 0.05 }
  0x6e   : >> { %s390_s16 = scalar_lea.vmem %s1100_s3, %s386_s24 }
  0x6f   : >> { %v329_v44 = vadd.f32 %v328_v41, %v326_v42  ;;  %s396_s20 = scalar_lea.vmem %s1099_s2, %s394_s18  ;;  %v391_v5 = vld [vmem:[%s390_s16] sm:$0x1]  ;;  %v413_v15 = vstv %s412_s11 }
  0x70   : >> { %s399_s22 = scalar_lea.vmem %s1100_s3, %s395_s27  ;;  %v397_v7 = vld [vmem:[%s396_s20] sm:$0x1]  ;;  %s415_s27 = scalar_lea.vmem %s793_s13, %s726_s14 }
  0x71   : >> { %v335_v46 = vadd.f32 %v334_v43, %v329_v44  ;;  %s405_s8 = scalar_lea.vmem %s1099_s2, %s403_s4  ;;  %v400_v9 = vld [vmem:[%s399_s22] sm:$0x1]  ;;  %s227_s14 = sadd.s32 1, %s726_s14  }
  0x72   : >> { %s408_s18 = scalar_lea.vmem %s1100_s3, %s404_s25  ;;  %v406_v11 = vld [vmem:[%s405_s8] sm:$0x1]  ;;  %p226_p4 = scmp.ge.s32.totalorder %s227_s14, %s1111_s6 }
  0x73   : >> { %v338_v48 = vadd.f32 %v337_v45, %v335_v46  ;;  %v409_v13 = vld [vmem:[%s408_s18] sm:$0x1] }
  0x75   : >> { %v344_v50 = vadd.f32 %v343_v47, %v338_v48 }
  0x77   : >> { %v347_v52 = vadd.f32 %v346_v49, %v344_v50 }
  0x79   : >> { %v353_v54 = vadd.f32 %v352_v51, %v347_v52 }
  0x7b   : >> { %v356_v56 = vadd.f32 %v355_v53, %v353_v54 }
  0x7d   : >> { %v362_v58 = vadd.f32 %v361_v55, %v356_v56 }
  0x7f   : >> { %v365_v60 = vadd.f32 %v364_v57, %v362_v58 }
  0x81   : >> { %v371_v62 = vadd.f32 %v370_v59, %v365_v60 }
  0x83   : >> { %v374_v0 = vadd.f32 %v373_v61, %v371_v62 }
  0x85   : >> { %v380_v2 = vadd.f32 %v379_v63, %v374_v0 }
  0x87   : >> { %v383_v4 = vadd.f32 %v382_v1, %v380_v2 }
  0x89   : >> { %v389_v6 = vadd.f32 %v388_v3, %v383_v4 }
  0x8b   : >> { %v392_v8 = vadd.f32 %v391_v5, %v389_v6 }
  0x8d   : >> { %v398_v10 = vadd.f32 %v397_v7, %v392_v8 }
  0x8f   : >> { %v401_v12 = vadd.f32 %v400_v9, %v398_v10 }
  0x91   : >> { %v407_v14 = vadd.f32 %v406_v11, %v401_v12  ;;  %229 = sbr.rel (!%p226_p4) target bundleno = 59 (0x3b), region = 110 }
  0x93   : >> { %v410_v16 = vadd.f32 %v409_v13, %v407_v14 }
  0x95   : >> { %v414_v17 = vmul.f32 %v413_v15, %v410_v16 }
  0x97   : >> { %416 = vst [vmem:[%s415_s27] sm:$0x1] %v414_v17 }
  0x98 PF: > { %v449_v19 = vld [vmem:[%s788_s10] sm:$0xff]  ;;  %v450_v22 = vld [vmem:[%s788_s10 + $0x8] sm:$0xff]  ;;  %v451_v24 = vld [vmem:[%s788_s10 + $0x10] sm:$0xff] }
  0x99   : > { %v452_v28 = vld [vmem:[%s788_s10 + $0x18] sm:$0xff]  ;;  %v453_v31 = vld [vmem:[%s788_s10 + $0x20] sm:$0xff]  ;;  %v454_v33 = vld [vmem:[%s788_s10 + $0x28] sm:$0xff] }
  0x9a   : > { %v455_v37 = vld [vmem:[%s788_s10 + $0x30] sm:$0xff]  ;;  %v456_v40 = vld [vmem:[%s788_s10 + $0x38] sm:$0xff]  ;;  %v457_v42 = vld [vmem:[%s788_s10 + $0x40] sm:$0xff] }
  0x9b   : > { %v458_v46 = vld [vmem:[%s788_s10 + $0x48] sm:$0xff]  ;;  %v459_v49 = vld [vmem:[%s788_s10 + $0x50] sm:$0xff]  ;;  %v460_v51 = vld [vmem:[%s788_s10 + $0x58] sm:$0xff] }
  0x9c   : > { %v461_v55 = vld [vmem:[%s788_s10 + $0x60] sm:$0xff]  ;;  %v462_v58 = vld [vmem:[%s788_s10 + $0x68] sm:$0xff]  ;;  %v463_v60 = vld [vmem:[%s788_s10 + $0x70] sm:$0xff] }
  0x9d   : > { %v464_v0 = vld [vmem:[%s788_s10 + $0x78] sm:$0xff]  ;;  %v465_v3 = vld [vmem:[%s788_s10 + $0x80] sm:$0xff]  ;;  %v466_v5 = vld [vmem:[%s788_s10 + $0x88] sm:$0xff] }
  0x9e   : > { %v417_v18 = vld [vmem:[%s793_s13] sm:$0xff]  ;;  %v418_v20 = vld [vmem:[%s793_s13 + $0x8] sm:$0xff]  ;;  %v419_v23 = vld [vmem:[%s793_s13 + $0x10] sm:$0xff] }
  0x9f   : > { %v481_v21 = vadd.f32 %v449_v19, %v417_v18  ;;  %v482_v25 = vadd.f32 %v450_v22, %v418_v20  ;;  %v483_v26 = vadd.f32 %v451_v24, %v419_v23  ;;  %v420_v27 = vld [vmem:[%s793_s13 + $0x18] sm:$0xff]  ;;  %v421_v29 = vld [vmem:[%s793_s13 + $0x20] sm:$0xff]  ;;  %v422_v32 = vld [vmem:[%s793_s13 + $0x28] sm:$0xff] }
  0xa0   : > { %v484_v30 = vadd.f32 %v452_v28, %v420_v27  ;;  %v485_v34 = vadd.f32 %v453_v31, %v421_v29  ;;  %v486_v35 = vadd.f32 %v454_v33, %v422_v32  ;;  %v423_v36 = vld [vmem:[%s793_s13 + $0x30] sm:$0xff]  ;;  %v424_v38 = vld [vmem:[%s793_s13 + $0x38] sm:$0xff]  ;;  %v425_v41 = vld [vmem:[%s793_s13 + $0x40] sm:$0xff] }
  0xa1   : > { %513 = vst [vmem:[%s793_s13] sm:$0xff] %v481_v21  ;;  %514 = vst [vmem:[%s793_s13 + $0x8] sm:$0xff] %v482_v25  ;;  %v487_v39 = vadd.f32 %v455_v37, %v423_v36  ;;  %v488_v43 = vadd.f32 %v456_v40, %v424_v38  ;;  %v489_v44 = vadd.f32 %v457_v42, %v425_v41  ;;  %v426_v45 = vld [vmem:[%s793_s13 + $0x48] sm:$0xff]  ;;  %v427_v47 = vld [vmem:[%s793_s13 + $0x50] sm:$0xff] }
  0xa2   : > { %515 = vst [vmem:[%s793_s13 + $0x10] sm:$0xff] %v483_v26  ;;  %516 = vst [vmem:[%s793_s13 + $0x18] sm:$0xff] %v484_v30  ;;  %v490_v48 = vadd.f32 %v458_v46, %v426_v45  ;;  %v428_v50 = vld [vmem:[%s793_s13 + $0x58] sm:$0xff]  ;;  %v491_v52 = vadd.f32 %v459_v49, %v427_v47  ;;  %v429_v54 = vld [vmem:[%s793_s13 + $0x60] sm:$0xff] }
  0xa3   : > { %517 = vst [vmem:[%s793_s13 + $0x20] sm:$0xff] %v485_v34  ;;  %518 = vst [vmem:[%s793_s13 + $0x28] sm:$0xff] %v486_v35  ;;  %v492_v53 = vadd.f32 %v460_v51, %v428_v50  ;;  %v430_v56 = vld [vmem:[%s793_s13 + $0x68] sm:$0xff]  ;;  %v493_v57 = vadd.f32 %v461_v55, %v429_v54  ;;  %v431_v59 = vld [vmem:[%s793_s13 + $0x70] sm:$0xff] }
  0xa4   : > { %519 = vst [vmem:[%s793_s13 + $0x30] sm:$0xff] %v487_v39  ;;  %520 = vst [vmem:[%s793_s13 + $0x38] sm:$0xff] %v488_v43  ;;  %v494_v61 = vadd.f32 %v462_v58, %v430_v56  ;;  %v495_v62 = vadd.f32 %v463_v60, %v431_v59  ;;  %v432_v63 = vld [vmem:[%s793_s13 + $0x78] sm:$0xff]  ;;  %v433_v1 = vld [vmem:[%s793_s13 + $0x80] sm:$0xff] }
  0xa5   : > { %521 = vst [vmem:[%s793_s13 + $0x40] sm:$0xff] %v489_v44  ;;  %522 = vst [vmem:[%s793_s13 + $0x48] sm:$0xff] %v490_v48  ;;  %v496_v2 = vadd.f32 %v464_v0, %v432_v63  ;;  %v434_v4 = vld [vmem:[%s793_s13 + $0x88] sm:$0xff]  ;;  %v497_v6 = vadd.f32 %v465_v3, %v433_v1  ;;  %v435_v8 = vld [vmem:[%s793_s13 + $0x90] sm:$0xff] }
  0xa6   : > { %523 = vst [vmem:[%s793_s13 + $0x50] sm:$0xff] %v491_v52  ;;  %524 = vst [vmem:[%s793_s13 + $0x58] sm:$0xff] %v492_v53  ;;  %v498_v7 = vadd.f32 %v466_v5, %v434_v4  ;;  %v467_v9 = vld [vmem:[%s788_s10 + $0x90] sm:$0xff]  ;;  %v436_v10 = vld [vmem:[%s793_s13 + $0x98] sm:$0xff] }
  0xa7   : > { %525 = vst [vmem:[%s793_s13 + $0x60] sm:$0xff] %v493_v57  ;;  %526 = vst [vmem:[%s793_s13 + $0x68] sm:$0xff] %v494_v61  ;;  %v499_v11 = vadd.f32 %v467_v9, %v435_v8  ;;  %v468_v12 = vld [vmem:[%s788_s10 + $0x98] sm:$0xff]  ;;  %v437_v13 = vld [vmem:[%s793_s13 + $0xa0] sm:$0xff] }
  0xa8   : > { %527 = vst [vmem:[%s793_s13 + $0x70] sm:$0xff] %v495_v62  ;;  %528 = vst [vmem:[%s793_s13 + $0x78] sm:$0xff] %v496_v2  ;;  %v469_v14 = vld [vmem:[%s788_s10 + $0xa0] sm:$0xff]  ;;  %v500_v15 = vadd.f32 %v468_v12, %v436_v10  ;;  %v438_v17 = vld [vmem:[%s793_s13 + $0xa8] sm:$0xff] }
  0xa9   : > { %529 = vst [vmem:[%s793_s13 + $0x80] sm:$0xff] %v497_v6  ;;  %530 = vst [vmem:[%s793_s13 + $0x88] sm:$0xff] %v498_v7  ;;  %v501_v16 = vadd.f32 %v469_v14, %v437_v13  ;;  %v470_v18 = vld [vmem:[%s788_s10 + $0xa8] sm:$0xff]  ;;  %v439_v19 = vld [vmem:[%s793_s13 + $0xb0] sm:$0xff] }
  0xaa   : > { %531 = vst [vmem:[%s793_s13 + $0x90] sm:$0xff] %v499_v11  ;;  %v502_v20 = vadd.f32 %v470_v18, %v438_v17  ;;  %v471_v21 = vld [vmem:[%s788_s10 + $0xb0] sm:$0xff]  ;;  %v440_v22 = vld [vmem:[%s793_s13 + $0xb8] sm:$0xff]  ;;  %532 = vst [vmem:[%s793_s13 + $0x98] sm:$0xff] %v500_v15 }
  0xab   : > { %v472_v23 = vld [vmem:[%s788_s10 + $0xb8] sm:$0xff]  ;;  %533 = vst [vmem:[%s793_s13 + $0xa0] sm:$0xff] %v501_v16  ;;  %v503_v24 = vadd.f32 %v471_v21, %v439_v19  ;;  %v441_v26 = vld [vmem:[%s793_s13 + $0xc0] sm:$0xff]  ;;  %v442_v28 = vld [vmem:[%s793_s13 + $0xc8] sm:$0xff] }
  0xac   : > { %v504_v25 = vadd.f32 %v472_v23, %v440_v22  ;;  %v473_v27 = vld [vmem:[%s788_s10 + $0xc0] sm:$0xff]  ;;  %534 = vst [vmem:[%s793_s13 + $0xa8] sm:$0xff] %v502_v20  ;;  %v474_v30 = vld [vmem:[%s788_s10 + $0xc8] sm:$0xff]  ;;  %v443_v31 = vld [vmem:[%s793_s13 + $0xd0] sm:$0xff] }
  0xad   : > { %v505_v29 = vadd.f32 %v473_v27, %v441_v26  ;;  %v475_v32 = vld [vmem:[%s788_s10 + $0xd0] sm:$0xff]  ;;  %535 = vst [vmem:[%s793_s13 + $0xb0] sm:$0xff] %v503_v24  ;;  %v506_v33 = vadd.f32 %v474_v30, %v442_v28  ;;  %v444_v35 = vld [vmem:[%s793_s13 + $0xd8] sm:$0xff]  ;;  %v445_v37 = vld [vmem:[%s793_s13 + $0xe0] sm:$0xff] }
  0xae   : > { %536 = vst [vmem:[%s793_s13 + $0xb8] sm:$0xff] %v504_v25  ;;  %v507_v34 = vadd.f32 %v475_v32, %v443_v31  ;;  %v476_v36 = vld [vmem:[%s788_s10 + $0xd8] sm:$0xff]  ;;  %v477_v39 = vld [vmem:[%s788_s10 + $0xe0] sm:$0xff]  ;;  %v446_v40 = vld [vmem:[%s793_s13 + $0xe8] sm:$0xff] }
  0xaf   : > { %537 = vst [vmem:[%s793_s13 + $0xc0] sm:$0xff] %v505_v29  ;;  %v508_v38 = vadd.f32 %v476_v36, %v444_v35  ;;  %v478_v41 = vld [vmem:[%s788_s10 + $0xe8] sm:$0xff]  ;;  %538 = vst [vmem:[%s793_s13 + $0xc8] sm:$0xff] %v506_v33  ;;  %v509_v42 = vadd.f32 %v477_v39, %v445_v37  ;;  %v447_v44 = vld [vmem:[%s793_s13 + $0xf0] sm:$0xff] }
  0xb0   : > { %539 = vst [vmem:[%s793_s13 + $0xd0] sm:$0xff] %v507_v34  ;;  %v510_v43 = vadd.f32 %v478_v41, %v446_v40  ;;  %v479_v45 = vld [vmem:[%s788_s10 + $0xf0] sm:$0xff]  ;;  %v448_v46 = vld [vmem:[%s793_s13 + $0xf8] sm:$0xff] }
  0xb1   : > { %540 = vst [vmem:[%s793_s13 + $0xd8] sm:$0xff] %v508_v38  ;;  %v511_v47 = vadd.f32 %v479_v45, %v447_v44  ;;  %v480_v48 = vld [vmem:[%s788_s10 + $0xf8] sm:$0xff]  ;;  %541 = vst [vmem:[%s793_s13 + $0xe0] sm:$0xff] %v509_v42 }
  0xb2   : > { %542 = vst [vmem:[%s793_s13 + $0xe8] sm:$0xff] %v510_v43  ;;  %v512_v49 = vadd.f32 %v480_v48, %v448_v46 }
  0xb3   : > { %543 = vst [vmem:[%s793_s13 + $0xf0] sm:$0xff] %v511_v47 }
  0xb4   : > { %544 = vst [vmem:[%s793_s13 + $0xf8] sm:$0xff] %v512_v49 }
  0xb5 PF: > { %s25_s1 = sadd.s32 1, %s722_s1  }
  0xb6   : > { %p22_p5 = scmp.ge.s32.totalorder %s25_s1, 4  }
  0xb8   :  { %24 = sbr.rel (!%p22_p5) target bundleno = 27 (0x1b), region = 121 }

// kernel: aggregator_forward.3
= control target key start
LH: loop header
LB: loop body
LE: loop exit
PB: predicated region body
PF: predicated region fallthrough
CT: control target
= control target key end

     0   :  { %v1084_v0 = vmov 0.0|0.0   ;;  %s1905_s1 = inlined_call_operand.vmem [shape: f32[512,128], index: 1, kind: input, shape index: {}]   ;;  %s1906_s0 = inlined_call_operand.vmem [shape: f32[256,512], index: 0, kind: input, shape index: {}]   ;;  %s1907_s2 = inlined_call_operand.vmem [shape: f32[256,128], index: 2, kind: input, shape index: {}]   ;;  %s1908_s3 = inlined_call_operand.vmem [shape: f32[256,128], index: 3, kind: output, shape index: {}]  }
   0x1   :  { %955 = vmatprep.subr.bf16.mxu1 %v1084_v0  ;;  %1003 = vmatprep.subr.bf16.mxu0 %v1084_v0  ;;  %v210_v1 = vld [vmem:[%s1905_s1] sm:$0xff]  ;;  %v211_v2 = vld [vmem:[%s1905_s1 + $0x8] sm:$0xff]  ;;  %v212_v6 = vld [vmem:[%s1905_s1 + $0x10] sm:$0xff] }
   0x2   :  { %v242_v3 = vld [vmem:[%s1905_s1 + $0x100] sm:$0xff]  ;;  %v956_v4 = vpack.c.bf16 %v211_v2, %v210_v1  ;;  %v243_v5 = vld [vmem:[%s1905_s1 + $0x108] sm:$0xff]  ;;  %v213_v7 = vld [vmem:[%s1905_s1 + $0x18] sm:$0xff] }
   0x3   :  { %v1004_v8 = vpack.c.bf16 %v243_v5, %v242_v3  ;;  %v244_v9 = vld [vmem:[%s1905_s1 + $0x110] sm:$0xff]  ;;  %v245_v10 = vld [vmem:[%s1905_s1 + $0x118] sm:$0xff]  ;;  %v959_v11 = vpack.c.bf16 %v213_v7, %v212_v6  ;;  %v214_v13 = vld [vmem:[%s1905_s1 + $0x20] sm:$0xff] }
   0x4   :  { %957 = vmatpush1.bf16.msra.mxu1 %v956_v4  ;;  %v1007_v12 = vpack.c.bf16 %v245_v10, %v244_v9  ;;  %v215_v14 = vld [vmem:[%s1905_s1 + $0x28] sm:$0xff]  ;;  %v246_v15 = vld [vmem:[%s1905_s1 + $0x120] sm:$0xff]  ;;  %v216_v19 = vld [vmem:[%s1905_s1 + $0x30] sm:$0xff] }
   0x5   :  { %1005 = vmatpush1.bf16.msra.mxu0 %v1004_v8  ;;  %958 = vmatprep.subr.bf16.mxu1 %v1084_v0  ;;  %v247_v16 = vld [vmem:[%s1905_s1 + $0x128] sm:$0xff]  ;;  %v962_v17 = vpack.c.bf16 %v215_v14, %v214_v13  ;;  %v217_v20 = vld [vmem:[%s1905_s1 + $0x38] sm:$0xff]  ;;  %v248_v21 = vld [vmem:[%s1905_s1 + $0x130] sm:$0xff] }
   0x6   :  { %1006 = vmatprep.subr.bf16.mxu0 %v1084_v0  ;;  %v1010_v18 = vpack.c.bf16 %v247_v16, %v246_v15  ;;  %v249_v22 = vld [vmem:[%s1905_s1 + $0x138] sm:$0xff]  ;;  %v965_v23 = vpack.c.bf16 %v217_v20, %v216_v19  ;;  %v218_v25 = vld [vmem:[%s1905_s1 + $0x40] sm:$0xff]  ;;  %v219_v26 = vld [vmem:[%s1905_s1 + $0x48] sm:$0xff] }
   0x7   :  { %v1013_v24 = vpack.c.bf16 %v249_v22, %v248_v21  ;;  %v250_v27 = vld [vmem:[%s1905_s1 + $0x140] sm:$0xff]  ;;  %v251_v28 = vld [vmem:[%s1905_s1 + $0x148] sm:$0xff]  ;;  %v968_v29 = vpack.c.bf16 %v219_v26, %v218_v25  ;;  %v220_v31 = vld [vmem:[%s1905_s1 + $0x50] sm:$0xff] }
   0x8   :  { %960 = vmatpush1.bf16.msra.mxu1 %v959_v11  ;;  %v1016_v30 = vpack.c.bf16 %v251_v28, %v250_v27  ;;  %v221_v32 = vld [vmem:[%s1905_s1 + $0x58] sm:$0xff]  ;;  %v252_v33 = vld [vmem:[%s1905_s1 + $0x150] sm:$0xff]  ;;  %v222_v37 = vld [vmem:[%s1905_s1 + $0x60] sm:$0xff] }
   0x9   :  { %1008 = vmatpush1.bf16.msra.mxu0 %v1007_v12  ;;  %961 = vmatprep.subr.bf16.mxu1 %v1084_v0  ;;  %v253_v34 = vld [vmem:[%s1905_s1 + $0x158] sm:$0xff]  ;;  %v971_v35 = vpack.c.bf16 %v221_v32, %v220_v31  ;;  %v223_v38 = vld [vmem:[%s1905_s1 + $0x68] sm:$0xff]  ;;  %v254_v39 = vld [vmem:[%s1905_s1 + $0x160] sm:$0xff] }
   0xa   :  { %1009 = vmatprep.subr.bf16.mxu0 %v1084_v0  ;;  %v1019_v36 = vpack.c.bf16 %v253_v34, %v252_v33  ;;  %v255_v40 = vld [vmem:[%s1905_s1 + $0x168] sm:$0xff]  ;;  %v85_v42 = vld [vmem:[%s1906_s0 + $0x18] sm:$0xff]  ;;  %v974_v43 = vpack.c.bf16 %v223_v38, %v222_v37  ;;  %v224_v45 = vld [vmem:[%s1905_s1 + $0x70] sm:$0xff] }
   0xb   :  { %v83_v41 = vld [vmem:[%s1906_s0 + $0x8] sm:$0xff]  ;;  %563 = vmatprep.mubr.f32.mxu0 %v85_v42  ;;  %v1022_v44 = vpack.c.bf16 %v255_v40, %v254_v39  ;;  %v225_v46 = vld [vmem:[%s1905_s1 + $0x78] sm:$0xff]  ;;  %v256_v47 = vld [vmem:[%s1905_s1 + $0x170] sm:$0xff] }
   0xc   :  { %963 = vmatpush1.bf16.msra.mxu1 %v962_v17  ;;  %338 = vmatprep.mubr.f32.mxu1 %v83_v41  ;;  %v257_v48 = vld [vmem:[%s1905_s1 + $0x178] sm:$0xff]  ;;  %v977_v49 = vpack.c.bf16 %v225_v46, %v224_v45  ;;  %v226_v51 = vld [vmem:[%s1905_s1 + $0x80] sm:$0xff]  ;;  %v227_v52 = vld [vmem:[%s1905_s1 + $0x88] sm:$0xff] }
   0xd   :  { %1011 = vmatpush1.bf16.msra.mxu0 %v1010_v18  ;;  %964 = vmatprep.subr.bf16.mxu1 %v1084_v0  ;;  %v1025_v50 = vpack.c.bf16 %v257_v48, %v256_v47  ;;  %v258_v53 = vld [vmem:[%s1905_s1 + $0x180] sm:$0xff]  ;;  %v259_v54 = vld [vmem:[%s1905_s1 + $0x188] sm:$0xff]  ;;  %v980_v55 = vpack.c.bf16 %v227_v52, %v226_v51  ;;  %v228_v57 = vld [vmem:[%s1905_s1 + $0x90] sm:$0xff] }
   0xe   :  { %1012 = vmatprep.subr.bf16.mxu0 %v1084_v0  ;;  %v1028_v56 = vpack.c.bf16 %v259_v54, %v258_v53  ;;  %v229_v58 = vld [vmem:[%s1905_s1 + $0x98] sm:$0xff]  ;;  %v260_v59 = vld [vmem:[%s1905_s1 + $0x190] sm:$0xff]  ;;  %v230_v63 = vld [vmem:[%s1905_s1 + $0xa0] sm:$0xff] }
   0xf   :  { %v261_v60 = vld [vmem:[%s1905_s1 + $0x198] sm:$0xff]  ;;  %v983_v61 = vpack.c.bf16 %v229_v58, %v228_v57  ;;  %v231_v1 = vld [vmem:[%s1905_s1 + $0xa8] sm:$0xff]  ;;  %v262_v2 = vld [vmem:[%s1905_s1 + $0x1a0] sm:$0xff] }
  0x10   :  { %966 = vmatpush1.bf16.msra.mxu1 %v965_v23  ;;  %v1031_v62 = vpack.c.bf16 %v261_v60, %v260_v59  ;;  %v263_v3 = vld [vmem:[%s1905_s1 + $0x1a8] sm:$0xff]  ;;  %v986_v4 = vpack.c.bf16 %v231_v1, %v230_v63  ;;  %v232_v6 = vld [vmem:[%s1905_s1 + $0xb0] sm:$0xff]  ;;  %v233_v7 = vld [vmem:[%s1905_s1 + $0xb8] sm:$0xff] }
  0x11   :  { %1014 = vmatpush1.bf16.msra.mxu0 %v1013_v24  ;;  %967 = vmatprep.subr.bf16.mxu1 %v1084_v0  ;;  %v1034_v5 = vpack.c.bf16 %v263_v3, %v262_v2  ;;  %v264_v8 = vld [vmem:[%s1905_s1 + $0x1b0] sm:$0xff]  ;;  %v265_v9 = vld [vmem:[%s1905_s1 + $0x1b8] sm:$0xff]  ;;  %v989_v10 = vpack.c.bf16 %v233_v7, %v232_v6  ;;  %v234_v12 = vld [vmem:[%s1905_s1 + $0xc0] sm:$0xff] }
  0x12   :  { %1015 = vmatprep.subr.bf16.mxu0 %v1084_v0  ;;  %v1037_v11 = vpack.c.bf16 %v265_v9, %v264_v8  ;;  %v235_v13 = vld [vmem:[%s1905_s1 + $0xc8] sm:$0xff]  ;;  %v266_v14 = vld [vmem:[%s1905_s1 + $0x1c0] sm:$0xff]  ;;  %v236_v18 = vld [vmem:[%s1905_s1 + $0xd0] sm:$0xff] }
  0x13   :  { %v267_v15 = vld [vmem:[%s1905_s1 + $0x1c8] sm:$0xff]  ;;  %v992_v16 = vpack.c.bf16 %v235_v13, %v234_v12  ;;  %v237_v19 = vld [vmem:[%s1905_s1 + $0xd8] sm:$0xff]  ;;  %v268_v20 = vld [vmem:[%s1905_s1 + $0x1d0] sm:$0xff] }
  0x14   :  { %969 = vmatpush1.bf16.msra.mxu1 %v968_v29  ;;  %v1040_v17 = vpack.c.bf16 %v267_v15, %v266_v14  ;;  %v269_v21 = vld [vmem:[%s1905_s1 + $0x1d8] sm:$0xff]  ;;  %v995_v22 = vpack.c.bf16 %v237_v19, %v236_v18  ;;  %v238_v24 = vld [vmem:[%s1905_s1 + $0xe0] sm:$0xff]  ;;  %v239_v25 = vld [vmem:[%s1905_s1 + $0xe8] sm:$0xff] }
  0x15   :  { %1017 = vmatpush1.bf16.msra.mxu0 %v1016_v30  ;;  %970 = vmatprep.subr.bf16.mxu1 %v1084_v0  ;;  %v1043_v23 = vpack.c.bf16 %v269_v21, %v268_v20  ;;  %v270_v26 = vld [vmem:[%s1905_s1 + $0x1e0] sm:$0xff]  ;;  %v271_v27 = vld [vmem:[%s1905_s1 + $0x1e8] sm:$0xff]  ;;  %v998_v28 = vpack.c.bf16 %v239_v25, %v238_v24  ;;  %v240_v30 = vld [vmem:[%s1905_s1 + $0xf0] sm:$0xff] }
  0x16   :  { %1018 = vmatprep.subr.bf16.mxu0 %v1084_v0  ;;  %v1046_v29 = vpack.c.bf16 %v271_v27, %v270_v26  ;;  %v241_v31 = vld [vmem:[%s1905_s1 + $0xf8] sm:$0xff]  ;;  %v272_v32 = vld [vmem:[%s1905_s1 + $0x1f0] sm:$0xff]  ;;  %v87_v38 = vld [vmem:[%s1906_s0 + $0x28] sm:$0xff] }
  0x17   :  { %v273_v33 = vld [vmem:[%s1905_s1 + $0x1f8] sm:$0xff]  ;;  %v1001_v34 = vpack.c.bf16 %v241_v31, %v240_v30  ;;  %v84_v37 = vld [vmem:[%s1906_s0 + $0x10] sm:$0xff]  ;;  %v91_v41 = vld [vmem:[%s1906_s0 + $0x48] sm:$0xff] }
  0x18   :  { %972 = vmatpush1.bf16.msra.mxu1 %v971_v35  ;;  %v1049_v35 = vpack.c.bf16 %v273_v33, %v272_v32  ;;  %v89_v39 = vld [vmem:[%s1906_s0 + $0x38] sm:$0xff]  ;;  %v88_v40 = vld [vmem:[%s1906_s0 + $0x30] sm:$0xff]  ;;  %v95_v45 = vld [vmem:[%s1906_s0 + $0x68] sm:$0xff] }
  0x19   :  { %1020 = vmatpush1.bf16.msra.mxu0 %v1019_v36  ;;  %973 = vmatprep.subr.bf16.mxu1 %v1084_v0  ;;  %v82_v36 = vld [vmem:[%s1906_s0] sm:$0xff]  ;;  %v93_v42 = vld [vmem:[%s1906_s0 + $0x58] sm:$0xff]  ;;  %v96_v48 = vld [vmem:[%s1906_s0 + $0x70] sm:$0xff] }
  0x1a   :  { %1021 = vmatprep.subr.bf16.mxu0 %v1084_v0  ;;  %v97_v46 = vld [vmem:[%s1906_s0 + $0x78] sm:$0xff]  ;;  %v94_v47 = vld [vmem:[%s1906_s0 + $0x60] sm:$0xff]  ;;  %v100_v52 = vld [vmem:[%s1906_s0 + $0x90] sm:$0xff] }
  0x1b   :  { %v98_v51 = vld [vmem:[%s1906_s0 + $0x80] sm:$0xff]  ;;  %v103_v53 = vld [vmem:[%s1906_s0 + $0xa8] sm:$0xff]  ;;  %v105_v54 = vld [vmem:[%s1906_s0 + $0xb8] sm:$0xff] }
  0x1c   :  { %975 = vmatpush1.bf16.msra.mxu1 %v974_v43  ;;  %v90_v43 = vld [vmem:[%s1906_s0 + $0x40] sm:$0xff]  ;;  %v107_v57 = vld [vmem:[%s1906_s0 + $0xc8] sm:$0xff]  ;;  %v109_v58 = vld [vmem:[%s1906_s0 + $0xd8] sm:$0xff] }
  0x1d   :  { %1023 = vmatpush1.bf16.msra.mxu0 %v1022_v44  ;;  %976 = vmatprep.subr.bf16.mxu1 %v1084_v0  ;;  %v92_v44 = vld [vmem:[%s1906_s0 + $0x50] sm:$0xff]  ;;  %v106_v59 = vld [vmem:[%s1906_s0 + $0xc0] sm:$0xff]  ;;  %v115_v2 = vld [vmem:[%s1906_s0 + $0x108] sm:$0xff] }
  0x1e   :  { %1024 = vmatprep.subr.bf16.mxu0 %v1084_v0  ;;  %v108_v60 = vld [vmem:[%s1906_s0 + $0xd0] sm:$0xff]  ;;  %v110_v63 = vld [vmem:[%s1906_s0 + $0xe0] sm:$0xff]  ;;  %v117_v3 = vld [vmem:[%s1906_s0 + $0x118] sm:$0xff] }
  0x1f   :  { %v112_v1 = vld [vmem:[%s1906_s0 + $0xf0] sm:$0xff]  ;;  %v119_v6 = vld [vmem:[%s1906_s0 + $0x128] sm:$0xff]  ;;  %v121_v7 = vld [vmem:[%s1906_s0 + $0x138] sm:$0xff] }
  0x20   :  { %978 = vmatpush1.bf16.msra.mxu1 %v977_v49  ;;  %v99_v49 = vld [vmem:[%s1906_s0 + $0x88] sm:$0xff]  ;;  %v118_v8 = vld [vmem:[%s1906_s0 + $0x120] sm:$0xff]  ;;  %v120_v9 = vld [vmem:[%s1906_s0 + $0x130] sm:$0xff] }
  0x21   :  { %1026 = vmatpush1.bf16.msra.mxu0 %v1025_v50  ;;  %979 = vmatprep.subr.bf16.mxu1 %v1084_v0  ;;  %v101_v50 = vld [vmem:[%s1906_s0 + $0x98] sm:$0xff]  ;;  %v122_v12 = vld [vmem:[%s1906_s0 + $0x140] sm:$0xff]  ;;  %v124_v13 = vld [vmem:[%s1906_s0 + $0x150] sm:$0xff] }
  0x22   :  { %1027 = vmatprep.subr.bf16.mxu0 %v1084_v0  ;;  %v127_v14 = vld [vmem:[%s1906_s0 + $0x168] sm:$0xff]  ;;  %v129_v15 = vld [vmem:[%s1906_s0 + $0x178] sm:$0xff]  ;;  %v130_v20 = vld [vmem:[%s1906_s0 + $0x180] sm:$0xff] }
  0x23   :  { %v131_v18 = vld [vmem:[%s1906_s0 + $0x188] sm:$0xff]  ;;  %v133_v19 = vld [vmem:[%s1906_s0 + $0x198] sm:$0xff]  ;;  %v132_v21 = vld [vmem:[%s1906_s0 + $0x190] sm:$0xff] }
  0x24   :  { %981 = vmatpush1.bf16.msra.mxu1 %v980_v55  ;;  %v102_v55 = vld [vmem:[%s1906_s0 + $0xa0] sm:$0xff]  ;;  %v136_v25 = vld [vmem:[%s1906_s0 + $0x1b0] sm:$0xff]  ;;  %v139_v26 = vld [vmem:[%s1906_s0 + $0x1c8] sm:$0xff] }
  0x25   :  { %1029 = vmatpush1.bf16.msra.mxu0 %v1028_v56  ;;  %982 = vmatprep.subr.bf16.mxu1 %v1084_v0  ;;  %v104_v56 = vld [vmem:[%s1906_s0 + $0xb0] sm:$0xff]  ;;  %v134_v24 = vld [vmem:[%s1906_s0 + $0x1a0] sm:$0xff]  ;;  %v141_v27 = vld [vmem:[%s1906_s0 + $0x1d8] sm:$0xff] }
  0x26   :  { %1030 = vmatprep.subr.bf16.mxu0 %v1084_v0  ;;  %v143_v30 = vld [vmem:[%s1906_s0 + $0x1e8] sm:$0xff]  ;;  %v145_v31 = vld [vmem:[%s1906_s0 + $0x1f8] sm:$0xff]  ;;  %v142_v32 = vld [vmem:[%s1906_s0 + $0x1e0] sm:$0xff] }
  0x27   :  { %v144_v33 = vld [vmem:[%s1906_s0 + $0x1f0] sm:$0xff] }
  0x28   :  { %984 = vmatpush1.bf16.msra.mxu1 %v983_v61  ;;  %v111_v61 = vld [vmem:[%s1906_s0 + $0xe8] sm:$0xff] }
  0x29   :  { %1032 = vmatpush1.bf16.msra.mxu0 %v1031_v62  ;;  %985 = vmatprep.subr.bf16.mxu1 %v1084_v0  ;;  %v113_v62 = vld [vmem:[%s1906_s0 + $0xf8] sm:$0xff] }
  0x2a   :  { %1033 = vmatprep.subr.bf16.mxu0 %v1084_v0 }
  0x2c   :  { %987 = vmatpush1.bf16.msra.mxu1 %v986_v4  ;;  %v114_v4 = vld [vmem:[%s1906_s0 + $0x100] sm:$0xff] }
  0x2d   :  { %1035 = vmatpush1.bf16.msra.mxu0 %v1034_v5  ;;  %988 = vmatprep.subr.bf16.mxu1 %v1084_v0  ;;  %v116_v5 = vld [vmem:[%s1906_s0 + $0x110] sm:$0xff] }
  0x2e   :  { %1036 = vmatprep.subr.bf16.mxu0 %v1084_v0 }
  0x30   :  { %990 = vmatpush1.bf16.msra.mxu1 %v989_v10  ;;  %v123_v10 = vld [vmem:[%s1906_s0 + $0x148] sm:$0xff] }
  0x31   :  { %1038 = vmatpush1.bf16.msra.mxu0 %v1037_v11  ;;  %991 = vmatprep.subr.bf16.mxu1 %v1084_v0  ;;  %v125_v11 = vld [vmem:[%s1906_s0 + $0x158] sm:$0xff] }
  0x32   :  { %1039 = vmatprep.subr.bf16.mxu0 %v1084_v0 }
  0x34   :  { %993 = vmatpush1.bf16.msra.mxu1 %v992_v16  ;;  %v126_v16 = vld [vmem:[%s1906_s0 + $0x160] sm:$0xff] }
  0x35   :  { %1041 = vmatpush1.bf16.msra.mxu0 %v1040_v17  ;;  %994 = vmatprep.subr.bf16.mxu1 %v1084_v0  ;;  %v128_v17 = vld [vmem:[%s1906_s0 + $0x170] sm:$0xff] }
  0x36   :  { %1042 = vmatprep.subr.bf16.mxu0 %v1084_v0 }
  0x38   :  { %996 = vmatpush1.bf16.msra.mxu1 %v995_v22  ;;  %v135_v22 = vld [vmem:[%s1906_s0 + $0x1a8] sm:$0xff] }
  0x39   :  { %1044 = vmatpush1.bf16.msra.mxu0 %v1043_v23  ;;  %997 = vmatprep.subr.bf16.mxu1 %v1084_v0  ;;  %v137_v23 = vld [vmem:[%s1906_s0 + $0x1b8] sm:$0xff] }
  0x3a   :  { %1045 = vmatprep.subr.bf16.mxu0 %v1084_v0 }
  0x3c   :  { %999 = vmatpush1.bf16.msra.mxu1 %v998_v28  ;;  %v138_v28 = vld [vmem:[%s1906_s0 + $0x1c0] sm:$0xff] }
  0x3d   :  { %1047 = vmatpush1.bf16.msra.mxu0 %v1046_v29  ;;  %1000 = vmatprep.subr.bf16.mxu1 %v1084_v0  ;;  %v140_v29 = vld [vmem:[%s1906_s0 + $0x1d0] sm:$0xff] }
  0x3e   :  { %1048 = vmatprep.subr.bf16.mxu0 %v1084_v0  ;;  %v86_v0 = vld [vmem:[%s1906_s0 + $0x20] sm:$0xff] }
  0x40   :  { %1002 = vmatpush1.bf16.msra.mxu1 %v1001_v34  ;;  %v147_v34 = vld [vmem:[%s1906_s0 + $0x208] sm:$0xff] }
  0x41   :  { %1050 = vmatpush1.bf16.msra.mxu0 %v1049_v35  ;;  %v149_v35 = vld [vmem:[%s1906_s0 + $0x218] sm:$0xff] }
  0x43   :  { %339 = vmatmul.mubr.f32.vlgmr.msra.gmra.mrb[0].mxu1 %v82_v36  ;;  %v146_v36 = vld [vmem:[%s1906_s0 + $0x200] sm:$0xff] }
  0x44   :  { %564 = vmatmul.mubr.f32.vlgmr.msra.gmra.mrb[0].mxu0 %v84_v37  ;;  %343 = vmatprep.mubr.f32.mxu1 %v87_v38  ;;  %v148_v37 = vld [vmem:[%s1906_s0 + $0x210] sm:$0xff]  ;;  %v151_v38 = vld [vmem:[%s1906_s0 + $0x228] sm:$0xff] }
  0x45   :  { %568 = vmatprep.mubr.f32.mxu0 %v89_v39  ;;  %v153_v39 = vld [vmem:[%s1906_s0 + $0x238] sm:$0xff] }
  0x47   :  { %344 = vmatmul.mubr.f32.gmra.mrb[2].mxu1 %v86_v0  ;;  %v150_v0 = vld [vmem:[%s1906_s0 + $0x220] sm:$0xff] }
  0x48   :  { %569 = vmatmul.mubr.f32.gmra.mrb[2].mxu0 %v88_v40  ;;  %348 = vmatprep.mubr.f32.mxu1 %v91_v41  ;;  %v152_v40 = vld [vmem:[%s1906_s0 + $0x230] sm:$0xff]  ;;  %v155_v41 = vld [vmem:[%s1906_s0 + $0x248] sm:$0xff] }
  0x49   :  { %573 = vmatprep.mubr.f32.mxu0 %v93_v42  ;;  %v157_v42 = vld [vmem:[%s1906_s0 + $0x258] sm:$0xff] }
  0x4b   :  { %349 = vmatmul.mubr.f32.gmra.mrb[4].mxu1 %v90_v43  ;;  %v154_v43 = vld [vmem:[%s1906_s0 + $0x240] sm:$0xff] }
  0x4c   :  { %574 = vmatmul.mubr.f32.gmra.mrb[4].mxu0 %v92_v44  ;;  %353 = vmatprep.mubr.f32.mxu1 %v95_v45  ;;  %v156_v44 = vld [vmem:[%s1906_s0 + $0x250] sm:$0xff]  ;;  %v159_v45 = vld [vmem:[%s1906_s0 + $0x268] sm:$0xff] }
  0x4d   :  { %578 = vmatprep.mubr.f32.mxu0 %v97_v46  ;;  %v161_v46 = vld [vmem:[%s1906_s0 + $0x278] sm:$0xff] }
  0x4f   :  { %354 = vmatmul.mubr.f32.gmra.mrb[6].mxu1 %v94_v47  ;;  %v158_v47 = vld [vmem:[%s1906_s0 + $0x260] sm:$0xff] }
  0x50   :  { %579 = vmatmul.mubr.f32.gmra.mrb[6].mxu0 %v96_v48  ;;  %358 = vmatprep.mubr.f32.mxu1 %v99_v49  ;;  %v160_v48 = vld [vmem:[%s1906_s0 + $0x270] sm:$0xff]  ;;  %v163_v49 = vld [vmem:[%s1906_s0 + $0x288] sm:$0xff] }
  0x51   :  { %583 = vmatprep.mubr.f32.mxu0 %v101_v50  ;;  %v165_v50 = vld [vmem:[%s1906_s0 + $0x298] sm:$0xff] }
  0x53   :  { %359 = vmatmul.mubr.f32.gmra.mrb[8].mxu1 %v98_v51  ;;  %v162_v51 = vld [vmem:[%s1906_s0 + $0x280] sm:$0xff] }
  0x54   :  { %584 = vmatmul.mubr.f32.gmra.mrb[8].mxu0 %v100_v52  ;;  %363 = vmatprep.mubr.f32.mxu1 %v103_v53  ;;  %v164_v52 = vld [vmem:[%s1906_s0 + $0x290] sm:$0xff]  ;;  %v167_v53 = vld [vmem:[%s1906_s0 + $0x2a8] sm:$0xff] }
  0x55   :  { %588 = vmatprep.mubr.f32.mxu0 %v105_v54  ;;  %v169_v54 = vld [vmem:[%s1906_s0 + $0x2b8] sm:$0xff] }
  0x57   :  { %364 = vmatmul.mubr.f32.gmra.mrb[10].mxu1 %v102_v55  ;;  %v166_v55 = vld [vmem:[%s1906_s0 + $0x2a0] sm:$0xff] }
  0x58   :  { %589 = vmatmul.mubr.f32.gmra.mrb[10].mxu0 %v104_v56  ;;  %368 = vmatprep.mubr.f32.mxu1 %v107_v57  ;;  %v168_v56 = vld [vmem:[%s1906_s0 + $0x2b0] sm:$0xff]  ;;  %v171_v57 = vld [vmem:[%s1906_s0 + $0x2c8] sm:$0xff] }
  0x59   :  { %593 = vmatprep.mubr.f32.mxu0 %v109_v58  ;;  %v173_v58 = vld [vmem:[%s1906_s0 + $0x2d8] sm:$0xff] }
  0x5b   :  { %369 = vmatmul.mubr.f32.gmra.mrb[12].mxu1 %v106_v59  ;;  %v170_v59 = vld [vmem:[%s1906_s0 + $0x2c0] sm:$0xff] }
  0x5c   :  { %594 = vmatmul.mubr.f32.gmra.mrb[12].mxu0 %v108_v60  ;;  %373 = vmatprep.mubr.f32.mxu1 %v111_v61  ;;  %v172_v60 = vld [vmem:[%s1906_s0 + $0x2d0] sm:$0xff]  ;;  %v175_v61 = vld [vmem:[%s1906_s0 + $0x2e8] sm:$0xff] }
  0x5d   :  { %598 = vmatprep.mubr.f32.mxu0 %v113_v62  ;;  %v177_v62 = vld [vmem:[%s1906_s0 + $0x2f8] sm:$0xff] }
  0x5f   :  { %374 = vmatmul.mubr.f32.gmra.mrb[14].mxu1 %v110_v63  ;;  %v174_v63 = vld [vmem:[%s1906_s0 + $0x2e0] sm:$0xff] }
  0x60   :  { %599 = vmatmul.mubr.f32.gmra.mrb[14].mxu0 %v112_v1  ;;  %378 = vmatprep.mubr.f32.mxu1 %v115_v2  ;;  %v176_v1 = vld [vmem:[%s1906_s0 + $0x2f0] sm:$0xff]  ;;  %v179_v2 = vld [vmem:[%s1906_s0 + $0x308] sm:$0xff] }
  0x61   :  { %603 = vmatprep.mubr.f32.mxu0 %v117_v3  ;;  %v181_v3 = vld [vmem:[%s1906_s0 + $0x318] sm:$0xff] }
  0x63   :  { %379 = vmatmul.mubr.f32.gmra.mrb[16].mxu1 %v114_v4  ;;  %v178_v4 = vld [vmem:[%s1906_s0 + $0x300] sm:$0xff] }
  0x64   :  { %604 = vmatmul.mubr.f32.gmra.mrb[16].mxu0 %v116_v5  ;;  %383 = vmatprep.mubr.f32.mxu1 %v119_v6  ;;  %v180_v5 = vld [vmem:[%s1906_s0 + $0x310] sm:$0xff]  ;;  %v183_v6 = vld [vmem:[%s1906_s0 + $0x328] sm:$0xff] }
  0x65   :  { %608 = vmatprep.mubr.f32.mxu0 %v121_v7  ;;  %v185_v7 = vld [vmem:[%s1906_s0 + $0x338] sm:$0xff] }
  0x67   :  { %384 = vmatmul.mubr.f32.gmra.mrb[18].mxu1 %v118_v8  ;;  %v182_v8 = vld [vmem:[%s1906_s0 + $0x320] sm:$0xff] }
  0x68   :  { %609 = vmatmul.mubr.f32.gmra.mrb[18].mxu0 %v120_v9  ;;  %388 = vmatprep.mubr.f32.mxu1 %v123_v10  ;;  %v184_v9 = vld [vmem:[%s1906_s0 + $0x330] sm:$0xff]  ;;  %v187_v10 = vld [vmem:[%s1906_s0 + $0x348] sm:$0xff] }
  0x69   :  { %613 = vmatprep.mubr.f32.mxu0 %v125_v11  ;;  %v189_v11 = vld [vmem:[%s1906_s0 + $0x358] sm:$0xff] }
  0x6b   :  { %389 = vmatmul.mubr.f32.gmra.mrb[20].mxu1 %v122_v12  ;;  %v186_v12 = vld [vmem:[%s1906_s0 + $0x340] sm:$0xff] }
  0x6c   :  { %614 = vmatmul.mubr.f32.gmra.mrb[20].mxu0 %v124_v13  ;;  %393 = vmatprep.mubr.f32.mxu1 %v127_v14  ;;  %v188_v13 = vld [vmem:[%s1906_s0 + $0x350] sm:$0xff]  ;;  %v191_v14 = vld [vmem:[%s1906_s0 + $0x368] sm:$0xff] }
  0x6d   :  { %618 = vmatprep.mubr.f32.mxu0 %v129_v15  ;;  %v193_v15 = vld [vmem:[%s1906_s0 + $0x378] sm:$0xff] }
  0x6f   :  { %394 = vmatmul.mubr.f32.gmra.mrb[22].mxu1 %v126_v16  ;;  %v190_v16 = vld [vmem:[%s1906_s0 + $0x360] sm:$0xff] }
  0x70   :  { %619 = vmatmul.mubr.f32.gmra.mrb[22].mxu0 %v128_v17  ;;  %398 = vmatprep.mubr.f32.mxu1 %v131_v18  ;;  %v192_v17 = vld [vmem:[%s1906_s0 + $0x370] sm:$0xff]  ;;  %v195_v18 = vld [vmem:[%s1906_s0 + $0x388] sm:$0xff] }
  0x71   :  { %623 = vmatprep.mubr.f32.mxu0 %v133_v19  ;;  %v197_v19 = vld [vmem:[%s1906_s0 + $0x398] sm:$0xff] }
  0x73   :  { %399 = vmatmul.mubr.f32.gmra.mrb[24].mxu1 %v130_v20  ;;  %v194_v20 = vld [vmem:[%s1906_s0 + $0x380] sm:$0xff] }
  0x74   :  { %624 = vmatmul.mubr.f32.gmra.mrb[24].mxu0 %v132_v21  ;;  %403 = vmatprep.mubr.f32.mxu1 %v135_v22  ;;  %v196_v21 = vld [vmem:[%s1906_s0 + $0x390] sm:$0xff]  ;;  %v199_v22 = vld [vmem:[%s1906_s0 + $0x3a8] sm:$0xff] }
  0x75   :  { %628 = vmatprep.mubr.f32.mxu0 %v137_v23  ;;  %v201_v23 = vld [vmem:[%s1906_s0 + $0x3b8] sm:$0xff] }
  0x77   :  { %404 = vmatmul.mubr.f32.gmra.mrb[26].mxu1 %v134_v24  ;;  %v198_v24 = vld [vmem:[%s1906_s0 + $0x3a0] sm:$0xff] }
  0x78   :  { %629 = vmatmul.mubr.f32.gmra.mrb[26].mxu0 %v136_v25  ;;  %408 = vmatprep.mubr.f32.mxu1 %v139_v26  ;;  %v200_v25 = vld [vmem:[%s1906_s0 + $0x3b0] sm:$0xff]  ;;  %v203_v26 = vld [vmem:[%s1906_s0 + $0x3c8] sm:$0xff] }
  0x79   :  { %633 = vmatprep.mubr.f32.mxu0 %v141_v27  ;;  %v205_v27 = vld [vmem:[%s1906_s0 + $0x3d8] sm:$0xff] }
  0x7b   :  { %409 = vmatmul.mubr.f32.gmra.mrb[28].mxu1 %v138_v28  ;;  %v202_v28 = vld [vmem:[%s1906_s0 + $0x3c0] sm:$0xff] }
  0x7c   :  { %634 = vmatmul.mubr.f32.gmra.mrb[28].mxu0 %v140_v29  ;;  %413 = vmatprep.mubr.f32.mxu1 %v143_v30  ;;  %v204_v29 = vld [vmem:[%s1906_s0 + $0x3d0] sm:$0xff]  ;;  %v207_v30 = vld [vmem:[%s1906_s0 + $0x3e8] sm:$0xff] }
  0x7d   :  { %638 = vmatprep.mubr.f32.mxu0 %v145_v31  ;;  %v209_v31 = vld [vmem:[%s1906_s0 + $0x3f8] sm:$0xff] }
  0x7f   :  { %414 = vmatmul.mubr.f32.gmra.mrb[30].mxu1 %v142_v32  ;;  %v206_v32 = vld [vmem:[%s1906_s0 + $0x3e0] sm:$0xff] }
  0x80   :  { %639 = vmatmul.mubr.f32.gmra.mrb[30].mxu0 %v144_v33  ;;  %418 = vmatprep.mubr.f32.mxu1 %v147_v34  ;;  %v208_v33 = vld [vmem:[%s1906_s0 + $0x3f0] sm:$0xff]  ;;  %v823_v34 = vld [vmem:[%s1907_s2] sm:$0xff] }
  0x81   :  { %643 = vmatprep.mubr.f32.mxu0 %v149_v35 }
  0x83   :  { %419 = vmatmul.mubr.f32.gmra.mrb[32].mxu1 %v146_v36  ;;  %v855_v36 = vadd.f32 1.0, %v823_v34 }
  0x84   :  { %644 = vmatmul.mubr.f32.gmra.mrb[32].mxu0 %v148_v37  ;;  %423 = vmatprep.mubr.f32.mxu1 %v151_v38 }
  0x85   :  { %648 = vmatprep.mubr.f32.mxu0 %v153_v39  ;;  %v824_v39 = vld [vmem:[%s1907_s2 + $0x8] sm:$0xff] }
  0x87   :  { %424 = vmatmul.mubr.f32.gmra.mrb[34].mxu1 %v150_v0 }
  0x88   :  { %649 = vmatmul.mubr.f32.gmra.mrb[34].mxu0 %v152_v40  ;;  %428 = vmatprep.mubr.f32.mxu1 %v155_v41 }
  0x89   :  { %653 = vmatprep.mubr.f32.mxu0 %v157_v42 }
  0x8b   :  { %429 = vmatmul.mubr.f32.gmra.mrb[36].mxu1 %v154_v43  ;;  %v856_v43 = vadd.f32 1.0, %v824_v39  ;;  %v832_v39 = vld [vmem:[%s1907_s2 + $0x48] sm:$0xff] }
  0x8c   :  { %654 = vmatmul.mubr.f32.gmra.mrb[36].mxu0 %v156_v44  ;;  %433 = vmatprep.mubr.f32.mxu1 %v159_v45 }
  0x8d   :  { %658 = vmatprep.mubr.f32.mxu0 %v161_v46  ;;  %v825_v46 = vld [vmem:[%s1907_s2 + $0x10] sm:$0xff] }
  0x8f   :  { %434 = vmatmul.mubr.f32.gmra.mrb[38].mxu1 %v158_v47 }
  0x90   :  { %659 = vmatmul.mubr.f32.gmra.mrb[38].mxu0 %v160_v48  ;;  %438 = vmatprep.mubr.f32.mxu1 %v163_v49 }
  0x91   :  { %663 = vmatprep.mubr.f32.mxu0 %v165_v50 }
  0x93   :  { %439 = vmatmul.mubr.f32.gmra.mrb[40].mxu1 %v162_v51  ;;  %v857_v51 = vadd.f32 1.0, %v825_v46  ;;  %v833_v46 = vld [vmem:[%s1907_s2 + $0x50] sm:$0xff] }
  0x94   :  { %664 = vmatmul.mubr.f32.gmra.mrb[40].mxu0 %v164_v52  ;;  %443 = vmatprep.mubr.f32.mxu1 %v167_v53 }
  0x95   :  { %668 = vmatprep.mubr.f32.mxu0 %v169_v54  ;;  %v826_v54 = vld [vmem:[%s1907_s2 + $0x18] sm:$0xff] }
  0x97   :  { %444 = vmatmul.mubr.f32.gmra.mrb[42].mxu1 %v166_v55 }
  0x98   :  { %669 = vmatmul.mubr.f32.gmra.mrb[42].mxu0 %v168_v56  ;;  %448 = vmatprep.mubr.f32.mxu1 %v171_v57 }
  0x99   :  { %673 = vmatprep.mubr.f32.mxu0 %v173_v58 }
  0x9b   :  { %449 = vmatmul.mubr.f32.gmra.mrb[44].mxu1 %v170_v59  ;;  %v858_v59 = vadd.f32 1.0, %v826_v54  ;;  %v834_v54 = vld [vmem:[%s1907_s2 + $0x58] sm:$0xff] }
  0x9c   :  { %674 = vmatmul.mubr.f32.gmra.mrb[44].mxu0 %v172_v60  ;;  %453 = vmatprep.mubr.f32.mxu1 %v175_v61 }
  0x9d   :  { %678 = vmatprep.mubr.f32.mxu0 %v177_v62  ;;  %v827_v62 = vld [vmem:[%s1907_s2 + $0x20] sm:$0xff] }
  0x9f   :  { %454 = vmatmul.mubr.f32.gmra.mrb[46].mxu1 %v174_v63 }
  0xa0   :  { %679 = vmatmul.mubr.f32.gmra.mrb[46].mxu0 %v176_v1  ;;  %458 = vmatprep.mubr.f32.mxu1 %v179_v2 }
  0xa1   :  { %683 = vmatprep.mubr.f32.mxu0 %v181_v3 }
  0xa3   :  { %459 = vmatmul.mubr.f32.gmra.mrb[48].mxu1 %v178_v4  ;;  %v859_v4 = vadd.f32 1.0, %v827_v62  ;;  %v835_v62 = vld [vmem:[%s1907_s2 + $0x60] sm:$0xff] }
  0xa4   :  { %684 = vmatmul.mubr.f32.gmra.mrb[48].mxu0 %v180_v5  ;;  %463 = vmatprep.mubr.f32.mxu1 %v183_v6 }
  0xa5   :  { %688 = vmatprep.mubr.f32.mxu0 %v185_v7  ;;  %v828_v7 = vld [vmem:[%s1907_s2 + $0x28] sm:$0xff] }
  0xa7   :  { %464 = vmatmul.mubr.f32.gmra.mrb[50].mxu1 %v182_v8 }
  0xa8   :  { %689 = vmatmul.mubr.f32.gmra.mrb[50].mxu0 %v184_v9  ;;  %468 = vmatprep.mubr.f32.mxu1 %v187_v10 }
  0xa9   :  { %693 = vmatprep.mubr.f32.mxu0 %v189_v11 }
  0xab   :  { %469 = vmatmul.mubr.f32.gmra.mrb[52].mxu1 %v186_v12  ;;  %v860_v12 = vadd.f32 1.0, %v828_v7  ;;  %v836_v7 = vld [vmem:[%s1907_s2 + $0x68] sm:$0xff] }
  0xac   :  { %694 = vmatmul.mubr.f32.gmra.mrb[52].mxu0 %v188_v13  ;;  %473 = vmatprep.mubr.f32.mxu1 %v191_v14 }
  0xad   :  { %698 = vmatprep.mubr.f32.mxu0 %v193_v15  ;;  %v829_v15 = vld [vmem:[%s1907_s2 + $0x30] sm:$0xff] }
  0xaf   :  { %474 = vmatmul.mubr.f32.gmra.mrb[54].mxu1 %v190_v16 }
  0xb0   :  { %699 = vmatmul.mubr.f32.gmra.mrb[54].mxu0 %v192_v17  ;;  %478 = vmatprep.mubr.f32.mxu1 %v195_v18 }
  0xb1   :  { %703 = vmatprep.mubr.f32.mxu0 %v197_v19 }
  0xb3   :  { %479 = vmatmul.mubr.f32.gmra.mrb[56].mxu1 %v194_v20  ;;  %v861_v20 = vadd.f32 1.0, %v829_v15  ;;  %v837_v15 = vld [vmem:[%s1907_s2 + $0x70] sm:$0xff] }
  0xb4   :  { %704 = vmatmul.mubr.f32.gmra.mrb[56].mxu0 %v196_v21  ;;  %483 = vmatprep.mubr.f32.mxu1 %v199_v22 }
  0xb5   :  { %708 = vmatprep.mubr.f32.mxu0 %v201_v23  ;;  %v830_v23 = vld [vmem:[%s1907_s2 + $0x38] sm:$0xff] }
  0xb7   :  { %484 = vmatmul.mubr.f32.gmra.mrb[58].mxu1 %v198_v24 }
  0xb8   :  { %709 = vmatmul.mubr.f32.gmra.mrb[58].mxu0 %v200_v25  ;;  %488 = vmatprep.mubr.f32.mxu1 %v203_v26 }
  0xb9   :  { %713 = vmatprep.mubr.f32.mxu0 %v205_v27 }
  0xbb   :  { %489 = vmatmul.mubr.f32.gmra.mrb[60].mxu1 %v202_v28  ;;  %v862_v28 = vadd.f32 1.0, %v830_v23  ;;  %v838_v23 = vld [vmem:[%s1907_s2 + $0x78] sm:$0xff] }
  0xbc   :  { %714 = vmatmul.mubr.f32.gmra.mrb[60].mxu0 %v204_v29  ;;  %493 = vmatprep.mubr.f32.mxu1 %v207_v30 }
  0xbd   :  { %718 = vmatprep.mubr.f32.mxu0 %v209_v31  ;;  %v831_v31 = vld [vmem:[%s1907_s2 + $0x40] sm:$0xff] }
  0xbf   :  { %494 = vmatmul.mubr.f32.gmra.mrb[62].mxu1 %v206_v32 }
  0xc0   :  { %719 = vmatmul.mubr.f32.gmra.mrb[62].mxu0 %v208_v33 }
 0x116   :  { %v340_v35 = vpop.f32.mrb[0].mxu1 }
 0x117   :  { %v565_v37 = vpop.f32.mrb[0].mxu0  ;;  %v342_v38 = vpop.f32.mrb[1].mxu1 }
 0x118   :  { %v566_v0 = vadd.f32 %v565_v37, %v340_v35  ;;  %v567_v40 = vpop.f32.mrb[1].mxu0 }
 0x11a   :  { %v887_v41 = vmul.f32 %v855_v36, %v566_v0  ;;  %v345_v42 = vpop.f32.mrb[2].mxu1  ;;  %v863_v36 = vadd.f32 1.0, %v831_v31  ;;  %v839_v31 = vld [vmem:[%s1907_s2 + $0x80] sm:$0xff] }
 0x11b   :  { %v570_v44 = vpop.f32.mrb[2].mxu0  ;;  %v347_v45 = vpop.f32.mrb[3].mxu1 }
 0x11c   :  { %919 = vst [vmem:[%s1908_s3] sm:$0xff] %v887_v41  ;;  %v571_v47 = vadd.f32 %v570_v44, %v345_v42  ;;  %v572_v48 = vpop.f32.mrb[3].mxu0 }
 0x11e   :  { %v888_v49 = vmul.f32 %v856_v43, %v571_v47  ;;  %v350_v50 = vpop.f32.mrb[4].mxu1  ;;  %v864_v43 = vadd.f32 1.0, %v832_v39  ;;  %v840_v39 = vld [vmem:[%s1907_s2 + $0x88] sm:$0xff] }
 0x11f   :  { %v575_v52 = vpop.f32.mrb[4].mxu0  ;;  %v352_v53 = vpop.f32.mrb[5].mxu1 }
 0x120   :  { %920 = vst [vmem:[%s1908_s3 + $0x8] sm:$0xff] %v888_v49  ;;  %v576_v55 = vadd.f32 %v575_v52, %v350_v50  ;;  %v577_v56 = vpop.f32.mrb[5].mxu0 }
 0x122   :  { %v889_v57 = vmul.f32 %v857_v51, %v576_v55  ;;  %v355_v58 = vpop.f32.mrb[6].mxu1  ;;  %v865_v51 = vadd.f32 1.0, %v833_v46  ;;  %v841_v46 = vld [vmem:[%s1907_s2 + $0x90] sm:$0xff] }
 0x123   :  { %v580_v60 = vpop.f32.mrb[6].mxu0  ;;  %v357_v61 = vpop.f32.mrb[7].mxu1 }
 0x124   :  { %921 = vst [vmem:[%s1908_s3 + $0x10] sm:$0xff] %v889_v57  ;;  %v581_v63 = vadd.f32 %v580_v60, %v355_v58  ;;  %v582_v1 = vpop.f32.mrb[7].mxu0 }
 0x126   :  { %v890_v2 = vmul.f32 %v858_v59, %v581_v63  ;;  %v360_v3 = vpop.f32.mrb[8].mxu1  ;;  %v866_v59 = vadd.f32 1.0, %v834_v54  ;;  %v842_v54 = vld [vmem:[%s1907_s2 + $0x98] sm:$0xff] }
 0x127   :  { %v585_v5 = vpop.f32.mrb[8].mxu0  ;;  %v362_v6 = vpop.f32.mrb[9].mxu1 }
 0x128   :  { %922 = vst [vmem:[%s1908_s3 + $0x18] sm:$0xff] %v890_v2  ;;  %v586_v8 = vadd.f32 %v585_v5, %v360_v3  ;;  %v587_v9 = vpop.f32.mrb[9].mxu0 }
 0x12a   :  { %v891_v10 = vmul.f32 %v859_v4, %v586_v8  ;;  %v365_v11 = vpop.f32.mrb[10].mxu1  ;;  %v867_v4 = vadd.f32 1.0, %v835_v62  ;;  %v843_v62 = vld [vmem:[%s1907_s2 + $0xa0] sm:$0xff] }
 0x12b   :  { %v590_v13 = vpop.f32.mrb[10].mxu0  ;;  %v367_v14 = vpop.f32.mrb[11].mxu1 }
 0x12c   :  { %923 = vst [vmem:[%s1908_s3 + $0x20] sm:$0xff] %v891_v10  ;;  %v591_v16 = vadd.f32 %v590_v13, %v365_v11  ;;  %v592_v17 = vpop.f32.mrb[11].mxu0 }
 0x12e   :  { %v892_v18 = vmul.f32 %v860_v12, %v591_v16  ;;  %v370_v19 = vpop.f32.mrb[12].mxu1  ;;  %v868_v12 = vadd.f32 1.0, %v836_v7  ;;  %v844_v7 = vld [vmem:[%s1907_s2 + $0xa8] sm:$0xff] }
 0x12f   :  { %v595_v21 = vpop.f32.mrb[12].mxu0  ;;  %v372_v22 = vpop.f32.mrb[13].mxu1 }
 0x130   :  { %924 = vst [vmem:[%s1908_s3 + $0x28] sm:$0xff] %v892_v18  ;;  %v596_v24 = vadd.f32 %v595_v21, %v370_v19  ;;  %v597_v25 = vpop.f32.mrb[13].mxu0 }
 0x132   :  { %v893_v26 = vmul.f32 %v861_v20, %v596_v24  ;;  %v375_v27 = vpop.f32.mrb[14].mxu1  ;;  %v869_v20 = vadd.f32 1.0, %v837_v15  ;;  %v845_v15 = vld [vmem:[%s1907_s2 + $0xb0] sm:$0xff] }
 0x133   :  { %v600_v29 = vpop.f32.mrb[14].mxu0  ;;  %v377_v30 = vpop.f32.mrb[15].mxu1 }
 0x134   :  { %925 = vst [vmem:[%s1908_s3 + $0x30] sm:$0xff] %v893_v26  ;;  %v601_v32 = vadd.f32 %v600_v29, %v375_v27  ;;  %v602_v33 = vpop.f32.mrb[15].mxu0 }
 0x136   :  { %v894_v34 = vmul.f32 %v862_v28, %v601_v32  ;;  %v380_v35 = vpop.f32.mrb[16].mxu1  ;;  %v870_v28 = vadd.f32 1.0, %v838_v23  ;;  %v846_v23 = vld [vmem:[%s1907_s2 + $0xb8] sm:$0xff] }
 0x137   :  { %v605_v37 = vpop.f32.mrb[16].mxu0  ;;  %v382_v38 = vpop.f32.mrb[17].mxu1 }
 0x138   :  { %926 = vst [vmem:[%s1908_s3 + $0x38] sm:$0xff] %v894_v34  ;;  %v606_v0 = vadd.f32 %v605_v37, %v380_v35  ;;  %v607_v40 = vpop.f32.mrb[17].mxu0 }
 0x13a   :  { %v895_v41 = vmul.f32 %v863_v36, %v606_v0  ;;  %v385_v42 = vpop.f32.mrb[18].mxu1  ;;  %v871_v36 = vadd.f32 1.0, %v839_v31  ;;  %v847_v31 = vld [vmem:[%s1907_s2 + $0xc0] sm:$0xff] }
 0x13b   :  { %v610_v44 = vpop.f32.mrb[18].mxu0  ;;  %v387_v45 = vpop.f32.mrb[19].mxu1 }
 0x13c   :  { %927 = vst [vmem:[%s1908_s3 + $0x40] sm:$0xff] %v895_v41  ;;  %v611_v47 = vadd.f32 %v610_v44, %v385_v42  ;;  %v612_v48 = vpop.f32.mrb[19].mxu0 }
 0x13e   :  { %v896_v49 = vmul.f32 %v864_v43, %v611_v47  ;;  %v390_v50 = vpop.f32.mrb[20].mxu1  ;;  %v872_v43 = vadd.f32 1.0, %v840_v39  ;;  %v848_v39 = vld [vmem:[%s1907_s2 + $0xc8] sm:$0xff] }
 0x13f   :  { %v615_v52 = vpop.f32.mrb[20].mxu0  ;;  %v392_v53 = vpop.f32.mrb[21].mxu1 }
 0x140   :  { %928 = vst [vmem:[%s1908_s3 + $0x48] sm:$0xff] %v896_v49  ;;  %v616_v55 = vadd.f32 %v615_v52, %v390_v50  ;;  %v617_v56 = vpop.f32.mrb[21].mxu0 }
 0x142   :  { %v897_v57 = vmul.f32 %v865_v51, %v616_v55  ;;  %v395_v58 = vpop.f32.mrb[22].mxu1  ;;  %v873_v51 = vadd.f32 1.0, %v841_v46  ;;  %v849_v46 = vld [vmem:[%s1907_s2 + $0xd0] sm:$0xff] }
 0x143   :  { %v620_v60 = vpop.f32.mrb[22].mxu0  ;;  %v397_v61 = vpop.f32.mrb[23].mxu1 }
 0x144   :  { %929 = vst [vmem:[%s1908_s3 + $0x50] sm:$0xff] %v897_v57  ;;  %v621_v63 = vadd.f32 %v620_v60, %v395_v58  ;;  %v622_v1 = vpop.f32.mrb[23].mxu0 }
 0x146   :  { %v898_v2 = vmul.f32 %v866_v59, %v621_v63  ;;  %v400_v3 = vpop.f32.mrb[24].mxu1  ;;  %v874_v59 = vadd.f32 1.0, %v842_v54  ;;  %v850_v54 = vld [vmem:[%s1907_s2 + $0xd8] sm:$0xff] }
 0x147   :  { %v625_v5 = vpop.f32.mrb[24].mxu0  ;;  %v402_v6 = vpop.f32.mrb[25].mxu1 }
 0x148   :  { %930 = vst [vmem:[%s1908_s3 + $0x58] sm:$0xff] %v898_v2  ;;  %v626_v8 = vadd.f32 %v625_v5, %v400_v3  ;;  %v627_v9 = vpop.f32.mrb[25].mxu0 }
 0x14a   :  { %v899_v10 = vmul.f32 %v867_v4, %v626_v8  ;;  %v405_v11 = vpop.f32.mrb[26].mxu1  ;;  %v875_v4 = vadd.f32 1.0, %v843_v62  ;;  %v851_v62 = vld [vmem:[%s1907_s2 + $0xe0] sm:$0xff] }
 0x14b   :  { %v630_v13 = vpop.f32.mrb[26].mxu0  ;;  %v407_v14 = vpop.f32.mrb[27].mxu1 }
 0x14c   :  { %931 = vst [vmem:[%s1908_s3 + $0x60] sm:$0xff] %v899_v10  ;;  %v631_v16 = vadd.f32 %v630_v13, %v405_v11  ;;  %v632_v17 = vpop.f32.mrb[27].mxu0 }
 0x14e   :  { %v900_v18 = vmul.f32 %v868_v12, %v631_v16  ;;  %v410_v19 = vpop.f32.mrb[28].mxu1  ;;  %v876_v12 = vadd.f32 1.0, %v844_v7  ;;  %v852_v7 = vld [vmem:[%s1907_s2 + $0xe8] sm:$0xff] }
 0x14f   :  { %v635_v21 = vpop.f32.mrb[28].mxu0  ;;  %v412_v22 = vpop.f32.mrb[29].mxu1 }
 0x150   :  { %932 = vst [vmem:[%s1908_s3 + $0x68] sm:$0xff] %v900_v18  ;;  %v636_v24 = vadd.f32 %v635_v21, %v410_v19  ;;  %v637_v25 = vpop.f32.mrb[29].mxu0 }
 0x152   :  { %v901_v26 = vmul.f32 %v869_v20, %v636_v24  ;;  %v415_v27 = vpop.f32.mrb[30].mxu1  ;;  %v877_v20 = vadd.f32 1.0, %v845_v15  ;;  %v853_v15 = vld [vmem:[%s1907_s2 + $0xf0] sm:$0xff] }
 0x153   :  { %v640_v29 = vpop.f32.mrb[30].mxu0  ;;  %v417_v30 = vpop.f32.mrb[31].mxu1 }
 0x154   :  { %933 = vst [vmem:[%s1908_s3 + $0x70] sm:$0xff] %v901_v26  ;;  %v641_v32 = vadd.f32 %v640_v29, %v415_v27  ;;  %v642_v33 = vpop.f32.mrb[31].mxu0 }
 0x156   :  { %v902_v34 = vmul.f32 %v870_v28, %v641_v32  ;;  %v420_v35 = vpop.f32.mrb[32].mxu1  ;;  %v878_v28 = vadd.f32 1.0, %v846_v23  ;;  %v854_v23 = vld [vmem:[%s1907_s2 + $0xf8] sm:$0xff] }
 0x157   :  { %v645_v37 = vpop.f32.mrb[32].mxu0  ;;  %v422_v38 = vpop.f32.mrb[33].mxu1 }
 0x158   :  { %934 = vst [vmem:[%s1908_s3 + $0x78] sm:$0xff] %v902_v34  ;;  %v646_v0 = vadd.f32 %v645_v37, %v420_v35  ;;  %v647_v40 = vpop.f32.mrb[33].mxu0 }
 0x15a   :  { %v903_v41 = vmul.f32 %v871_v36, %v646_v0  ;;  %v425_v42 = vpop.f32.mrb[34].mxu1  ;;  %v879_v36 = vadd.f32 1.0, %v847_v31 }
 0x15b   :  { %v650_v44 = vpop.f32.mrb[34].mxu0  ;;  %v427_v45 = vpop.f32.mrb[35].mxu1 }
 0x15c   :  { %935 = vst [vmem:[%s1908_s3 + $0x80] sm:$0xff] %v903_v41  ;;  %v651_v47 = vadd.f32 %v650_v44, %v425_v42  ;;  %v652_v48 = vpop.f32.mrb[35].mxu0 }
 0x15e   :  { %v904_v49 = vmul.f32 %v872_v43, %v651_v47  ;;  %v430_v50 = vpop.f32.mrb[36].mxu1  ;;  %v880_v43 = vadd.f32 1.0, %v848_v39 }
 0x15f   :  { %v655_v52 = vpop.f32.mrb[36].mxu0  ;;  %v432_v53 = vpop.f32.mrb[37].mxu1 }
 0x160   :  { %936 = vst [vmem:[%s1908_s3 + $0x88] sm:$0xff] %v904_v49  ;;  %v656_v55 = vadd.f32 %v655_v52, %v430_v50  ;;  %v657_v56 = vpop.f32.mrb[37].mxu0 }
 0x162   :  { %v905_v57 = vmul.f32 %v873_v51, %v656_v55  ;;  %v435_v58 = vpop.f32.mrb[38].mxu1  ;;  %v881_v51 = vadd.f32 1.0, %v849_v46 }
 0x163   :  { %v660_v60 = vpop.f32.mrb[38].mxu0  ;;  %v437_v61 = vpop.f32.mrb[39].mxu1 }
 0x164   :  { %937 = vst [vmem:[%s1908_s3 + $0x90] sm:$0xff] %v905_v57  ;;  %v661_v63 = vadd.f32 %v660_v60, %v435_v58  ;;  %v662_v1 = vpop.f32.mrb[39].mxu0 }
 0x166   :  { %v906_v2 = vmul.f32 %v874_v59, %v661_v63  ;;  %v440_v3 = vpop.f32.mrb[40].mxu1  ;;  %v882_v59 = vadd.f32 1.0, %v850_v54 }
 0x167   :  { %v665_v5 = vpop.f32.mrb[40].mxu0  ;;  %v442_v6 = vpop.f32.mrb[41].mxu1 }
 0x168   :  { %938 = vst [vmem:[%s1908_s3 + $0x98] sm:$0xff] %v906_v2  ;;  %v666_v8 = vadd.f32 %v665_v5, %v440_v3  ;;  %v667_v9 = vpop.f32.mrb[41].mxu0 }
 0x16a   :  { %v907_v10 = vmul.f32 %v875_v4, %v666_v8  ;;  %v445_v11 = vpop.f32.mrb[42].mxu1  ;;  %v883_v4 = vadd.f32 1.0, %v851_v62 }
 0x16b   :  { %v670_v13 = vpop.f32.mrb[42].mxu0  ;;  %v447_v14 = vpop.f32.mrb[43].mxu1 }
 0x16c   :  { %939 = vst [vmem:[%s1908_s3 + $0xa0] sm:$0xff] %v907_v10  ;;  %v671_v16 = vadd.f32 %v670_v13, %v445_v11  ;;  %v672_v17 = vpop.f32.mrb[43].mxu0 }
 0x16e   :  { %v908_v18 = vmul.f32 %v876_v12, %v671_v16  ;;  %v450_v19 = vpop.f32.mrb[44].mxu1  ;;  %v884_v12 = vadd.f32 1.0, %v852_v7 }
 0x16f   :  { %v675_v21 = vpop.f32.mrb[44].mxu0  ;;  %v452_v22 = vpop.f32.mrb[45].mxu1 }
 0x170   :  { %940 = vst [vmem:[%s1908_s3 + $0xa8] sm:$0xff] %v908_v18  ;;  %v676_v24 = vadd.f32 %v675_v21, %v450_v19  ;;  %v677_v25 = vpop.f32.mrb[45].mxu0 }
 0x172   :  { %v909_v26 = vmul.f32 %v877_v20, %v676_v24  ;;  %v455_v27 = vpop.f32.mrb[46].mxu1  ;;  %v885_v20 = vadd.f32 1.0, %v853_v15 }
 0x173   :  { %v680_v29 = vpop.f32.mrb[46].mxu0  ;;  %v457_v30 = vpop.f32.mrb[47].mxu1 }
 0x174   :  { %941 = vst [vmem:[%s1908_s3 + $0xb0] sm:$0xff] %v909_v26  ;;  %v681_v32 = vadd.f32 %v680_v29, %v455_v27  ;;  %v682_v33 = vpop.f32.mrb[47].mxu0 }
 0x176   :  { %v910_v34 = vmul.f32 %v878_v28, %v681_v32  ;;  %v460_v35 = vpop.f32.mrb[48].mxu1  ;;  %v886_v28 = vadd.f32 1.0, %v854_v23 }
 0x177   :  { %v685_v37 = vpop.f32.mrb[48].mxu0  ;;  %v462_v38 = vpop.f32.mrb[49].mxu1 }
 0x178   :  { %942 = vst [vmem:[%s1908_s3 + $0xb8] sm:$0xff] %v910_v34  ;;  %v686_v0 = vadd.f32 %v685_v37, %v460_v35  ;;  %v687_v40 = vpop.f32.mrb[49].mxu0 }
 0x17a   :  { %v911_v41 = vmul.f32 %v879_v36, %v686_v0  ;;  %v465_v42 = vpop.f32.mrb[50].mxu1 }
 0x17b   :  { %v690_v44 = vpop.f32.mrb[50].mxu0  ;;  %v467_v45 = vpop.f32.mrb[51].mxu1 }
 0x17c   :  { %943 = vst [vmem:[%s1908_s3 + $0xc0] sm:$0xff] %v911_v41  ;;  %v691_v47 = vadd.f32 %v690_v44, %v465_v42  ;;  %v692_v48 = vpop.f32.mrb[51].mxu0 }
 0x17e   :  { %v912_v49 = vmul.f32 %v880_v43, %v691_v47  ;;  %v470_v50 = vpop.f32.mrb[52].mxu1 }
 0x17f   :  { %v695_v52 = vpop.f32.mrb[52].mxu0  ;;  %v472_v53 = vpop.f32.mrb[53].mxu1 }
 0x180   :  { %944 = vst [vmem:[%s1908_s3 + $0xc8] sm:$0xff] %v912_v49  ;;  %v696_v55 = vadd.f32 %v695_v52, %v470_v50  ;;  %v697_v56 = vpop.f32.mrb[53].mxu0 }
 0x182   :  { %v913_v57 = vmul.f32 %v881_v51, %v696_v55  ;;  %v475_v58 = vpop.f32.mrb[54].mxu1 }
 0x183   :  { %v700_v60 = vpop.f32.mrb[54].mxu0  ;;  %v477_v61 = vpop.f32.mrb[55].mxu1 }
 0x184   :  { %945 = vst [vmem:[%s1908_s3 + $0xd0] sm:$0xff] %v913_v57  ;;  %v701_v63 = vadd.f32 %v700_v60, %v475_v58  ;;  %v702_v1 = vpop.f32.mrb[55].mxu0 }
 0x186   :  { %v914_v2 = vmul.f32 %v882_v59, %v701_v63  ;;  %v480_v3 = vpop.f32.mrb[56].mxu1 }
 0x187   :  { %v705_v5 = vpop.f32.mrb[56].mxu0  ;;  %v482_v6 = vpop.f32.mrb[57].mxu1 }
 0x188   :  { %946 = vst [vmem:[%s1908_s3 + $0xd8] sm:$0xff] %v914_v2  ;;  %v706_v8 = vadd.f32 %v705_v5, %v480_v3  ;;  %v707_v9 = vpop.f32.mrb[57].mxu0 }
 0x18a   :  { %v915_v10 = vmul.f32 %v883_v4, %v706_v8  ;;  %v485_v11 = vpop.f32.mrb[58].mxu1 }
 0x18b   :  { %v710_v13 = vpop.f32.mrb[58].mxu0  ;;  %v487_v14 = vpop.f32.mrb[59].mxu1 }
 0x18c   :  { %947 = vst [vmem:[%s1908_s3 + $0xe0] sm:$0xff] %v915_v10  ;;  %v711_v16 = vadd.f32 %v710_v13, %v485_v11  ;;  %v712_v17 = vpop.f32.mrb[59].mxu0 }
 0x18e   :  { %v916_v18 = vmul.f32 %v884_v12, %v711_v16  ;;  %v490_v19 = vpop.f32.mrb[60].mxu1 }
 0x18f   :  { %v715_v21 = vpop.f32.mrb[60].mxu0  ;;  %v492_v22 = vpop.f32.mrb[61].mxu1 }
 0x190   :  { %948 = vst [vmem:[%s1908_s3 + $0xe8] sm:$0xff] %v916_v18  ;;  %v716_v24 = vadd.f32 %v715_v21, %v490_v19  ;;  %v717_v25 = vpop.f32.mrb[61].mxu0 }
 0x192   :  { %v917_v26 = vmul.f32 %v885_v20, %v716_v24  ;;  %v495_v27 = vpop.f32.mrb[62].mxu1 }
 0x193   :  { %v720_v29 = vpop.f32.mrb[62].mxu0  ;;  %v497_v30 = vpop.f32.mrb[63].mxu1 }
 0x194   :  { %949 = vst [vmem:[%s1908_s3 + $0xf0] sm:$0xff] %v917_v26  ;;  %v721_v31 = vadd.f32 %v720_v29, %v495_v27  ;;  %v722_v32 = vpop.f32.mrb[63].mxu0 }
 0x196   :  { %v918_v33 = vmul.f32 %v886_v28, %v721_v31 }
 0x198   :  { %950 = vst [vmem:[%s1908_s3 + $0xf8] sm:$0xff] %v918_v33 }

</bundles_post_ra>
